<compile_context>
chip_gen: v7x
topology: tpu7x:2x2x1
jax: 0.10.0
libtpu: 0.0.40
codegen_flags: <defaults>
</compile_context>

<pallas_src>
import functools
import math

import jax
import jax.numpy as jnp
import numpy as np
from jax.experimental import pallas as pl
from jax.experimental.pallas import tpu as pltpu


_EXP_BUMP = 1 << 23                      # +1 exponent step: keys stay normal floats
_F32_MAX = float(np.finfo(np.float32).max)


# ----------------------------------------------------------------------------
# Pallas kernel
# ----------------------------------------------------------------------------
def _knn_kernel(pe_ref, npe_ref, ve_ref, pa_ref, npa_ref, va_ref,
                tr_ref, tc_ref, out_ref, *, k):
    _, R, D = pe_ref.shape
    nbits = max(1, (R - 1).bit_length())          # index bits packed into the key
    hi_mask = jnp.int32(~((1 << nbits) - 1))
    big = jnp.float32(_F32_MAX)

    def sq_dist(x, y):
        # ||x_r - y_c||^2 via the Gram expansion; the column-norm row comes from
        # a tiny MXU mat-vec so no (R,1)->(1,R) transpose is needed.
        xy = jax.lax.dot_general(x, y, (((1,), (1,)), ((), ())),
                                 preferred_element_type=jnp.float32)       # (R, R)
        x2 = jnp.sum(x * x, axis=-1, keepdims=True)                        # (R, 1)
        y2 = jax.lax.dot_general(jnp.ones((1, D), jnp.float32), y * y,
                                 (((1,), (1,)), ((), ())),
                                 preferred_element_type=jnp.float32)       # (1, R)
        return jnp.clip(x2 + y2 - 2.0 * xy, 0.0, 1e30)

    def masked_key(d_sq):
        # Pack the column index into the low mantissa bits so that a single min
        # reduction yields (min distance, first-occurrence argmin).  Ordering of
        # non-negative floats == ordering of their int32 bit patterns; the
        # +2^23 bump keeps every key a normal (non-subnormal, non-NaN) float.
        valid = tr_ref[...] == tc_ref[...]                                  # (R, R)
        col = jax.lax.broadcasted_iota(jnp.int32, d_sq.shape, 1)
        bits = pltpu.bitcast(d_sq, jnp.int32)
        key = pltpu.bitcast((bits & hi_mask) + (col + _EXP_BUMP), jnp.float32)
        return jnp.where(valid, key, big)

    def key_to_sqdist(key):
        bits = (pltpu.bitcast(key, jnp.int32) - _EXP_BUMP) & hi_mask
        return pltpu.bitcast(bits, jnp.float32)

    # ---- loop 1: global positions drive the argmin; velocities gathered ------
    dv_sq = sq_dist(ve_ref[0], va_ref[0])                                   # (R, R)
    kg = masked_key(sq_dist(pe_ref[0], pa_ref[0]))                          # (R, R)

    g_acc = jnp.zeros((R, 1), jnp.float32)
    v_acc = jnp.zeros((R, 1), jnp.float32)
    # k is a small static constant -> unrolled Python loop (switch to
    # lax.fori_loop(..., unroll=True) only if k grows beyond ~8).
    for _ in range(k):
        kmin = jnp.min(kg, axis=-1, keepdims=True)                          # (R, 1)
        g_acc = g_acc + jnp.sqrt(key_to_sqdist(kmin))
        sel = kg == kmin                            # exactly one hit per row
        v_acc = v_acc + jnp.sqrt(
            jnp.sum(jnp.where(sel, dv_sq, 0.0), axis=-1, keepdims=True))
        kg = jnp.where(sel, big, kg)

    # ---- loop 2: normalized positions, sorted independently ------------------
    kn = masked_key(sq_dist(npe_ref[0], npa_ref[0]))
    n_acc = jnp.zeros((R, 1), jnp.float32)
    for _ in range(k):
        kmin = jnp.min(kn, axis=-1, keepdims=True)
        n_acc = n_acc + jnp.sqrt(key_to_sqdist(kmin))
        kn = jnp.where(kn == kmin, big, kn)

    out_ref[0] = jnp.concatenate([g_acc, n_acc, v_acc], axis=1)             # (R, 3)


# ----------------------------------------------------------------------------
# Plain-JAX glue: per-group normalization, velocity differencing, flattening.
# ----------------------------------------------------------------------------
def _group_normalize(p, groups, n_bgroups):
    """Per-group mean/std normalization mirroring the torch reference."""
    B, F, J, C = p.shape
    onehot = jax.nn.one_hot(groups, n_bgroups, dtype=p.dtype)               # (J, G)
    cnt = jnp.sum(onehot, axis=0)                                           # (G,)

    sum_fj = jnp.einsum('bfjc,jg->bgc', p, onehot)                          # (B, G, C)
    mean = sum_fj / (F * cnt)[None, :, None]
    mean_pj = jnp.einsum('bgc,jg->bjc', mean, onehot)                       # (B, J, C)
    centered = p - mean_pj[:, None]                                         # (B, F, J, C)

    n = cnt * C                                                             # elems per (b, f, g)
    m23 = jnp.einsum('bfjc,jg->bfg', centered, onehot) / n                  # (B, F, G)
    m23_pj = jnp.einsum('bfg,jg->bfj', m23, onehot)
    dev = centered - m23_pj[..., None]
    var = jnp.einsum('bfjc,jg->bfg', dev * dev, onehot) / (n - 1.0)         # unbiased
    std_pj = jnp.einsum('bfg,jg->bfj', jnp.sqrt(var), onehot)
    return centered / std_pj[..., None]


def _prepare(expected, actual, n_bgroups):
    B, F, J, _ = expected.shape
    p_e = expected[..., :3]
    p_a = actual[..., :3]
    ge = jnp.argmax(expected[0, 0, :, 3:], axis=-1)
    ga = jnp.argmax(actual[0, 0, :, 3:], axis=-1)

    def flat(p):                                   # (B, F, J, 3) -> (B, J, 3F)
        return jnp.transpose(p, (0, 2, 1, 3)).reshape(B, J, F * 3)

    def velocity(p):
        v = jnp.concatenate([jnp.zeros_like(p[:, :1]), p[:, 1:] - p[:, :-1]], axis=1)
        return flat(v)

    npe = _group_normalize(p_e, ge, n_bgroups)
    npa = _group_normalize(p_a, ga, n_bgroups)
    return (flat(p_e), flat(p_a), flat(npe), flat(npa),
            velocity(p_e), velocity(p_a), ge, ga)


# ----------------------------------------------------------------------------
# Block-batch selection (padding-aware VMEM estimate, megacore-aware).
# ----------------------------------------------------------------------------
def _pad_to(x, m):
    return -(-x // m) * m


def _vmem_estimate_bytes(R, D):
    Dp = _pad_to(D, 128)
    Rl = _pad_to(R, 128)
    Rs = _pad_to(R, 8)
    in_bytes = 2 * 6 * Rs * Dp * 4             # six streams, double-buffered
    tag_bytes = 2 * (Rs * 128 + 8 * Rl) * 4    # (R,1) + (1,R) tags, padded
    out_bytes = 2 * Rs * 128 * 4               # (R,3) output block, lane-padded
    tmp_bytes = 6 * Rs * Rl * 4                # live (R,R) temporaries budget
    return in_bytes + tag_bytes + out_bytes + tmp_bytes


def _min_grid_steps():
    # Chips with 2 TensorCores (v7x, v4 / v5p megacore) need >= 2 grid steps
    # for the "parallel" axis to use both cores; single-TC chips prefer Bb max.
    try:
        kind = jax.devices()[0].device_kind.lower()
    except Exception:
        return 1
    return 2 if any(t in kind for t in ("v7", "v4", "v5p")) else 1


def _pick_block_batch(B, J, D, max_rows=128, vmem_budget=24 << 20,
                      min_grid_steps=None):
    if min_grid_steps is None:
        min_grid_steps = _min_grid_steps()
    cand = [bb for bb in range(1, B + 1)
            if B % bb == 0 and bb * J <= max_rows
            and _vmem_estimate_bytes(bb * J, D) <= vmem_budget]
    if not cand:
        cand = [1]
    preferred = [bb for bb in cand if B // bb >= min_grid_steps]
    return max(preferred) if preferred else max(cand)


# ----------------------------------------------------------------------------
# Public entry point.
# ----------------------------------------------------------------------------
def knn_loss(expected, actual, n_bgroups, k, block_batch=None):
    """Pallas implementation of KNNLoss.forward (output_indices=False)."""
    B, F, J, _ = expected.shape
    D = 3 * F
    pe, pa, npe, npa, ve, va, ge, ga = _prepare(expected, actual, n_bgroups)

    Bb = _pick_block_batch(B, J, D) if block_batch is None else block_batch
    assert B % Bb == 0, "block_batch must divide the batch size"
    nb = B // Bb
    R = Bb * J

    # Free metadata reshape: (B, J, D) -> (nb, R=Bb*J, D); no HBM copy.
    def pack(a):
        return a.reshape(nb, R, D)

    # Row/column tags: valid pair <=> same batch slot AND same body group.
    slot = jnp.arange(R, dtype=jnp.int32) // J
    tag_row = (slot * n_bgroups + jnp.tile(ge.astype(jnp.int32), Bb)).reshape(R, 1)
    tag_col = (slot * n_bgroups + jnp.tile(ga.astype(jnp.int32), Bb)).reshape(1, R)

    kernel = functools.partial(_knn_kernel, k=k)

    def stream_spec():
        return pl.BlockSpec((1, R, D), lambda i: (i, 0, 0))

    vmem_limit = int(min(32 << 20, max(16 << 20, 2 * _vmem_estimate_bytes(R, D))))

    rows_out = pl.pallas_call(
        kernel,
        out_shape=jax.ShapeDtypeStruct((nb, R, 3), jnp.float32),
        grid_spec=pltpu.PrefetchScalarGridSpec(
            num_scalar_prefetch=0,
            grid=(nb,),
            in_specs=[
                stream_spec(), stream_spec(), stream_spec(),   # pe, npe, ve
                stream_spec(), stream_spec(), stream_spec(),   # pa, npa, va
                pl.BlockSpec((R, 1), lambda i: (0, 0)),
                pl.BlockSpec((1, R), lambda i: (0, 0)),
            ],
            out_specs=pl.BlockSpec((1, R, 3), lambda i: (i, 0, 0)),
        ),
        compiler_params=pltpu.CompilerParams(
            dimension_semantics=("parallel",),
            vmem_limit_bytes=vmem_limit),
    )(pack(pe), pack(npe), pack(ve), pack(pa), pack(npa), pack(va),
      tag_row, tag_col)

    sums = jnp.sum(rows_out, axis=(0, 1))            # (3,): [glob, norm, vel]
    scale = 1.0 / (B * J * k * math.sqrt(F))
    return sums[0] * scale, sums[1] * scale, sums[2] * scale


# ----------------------------------------------------------------------------
# Pure-JAX reference (sanity check of the kernel).
# ----------------------------------------------------------------------------
def knn_loss_ref(expected, actual, n_bgroups, k):
    B, F, J, _ = expected.shape
    pe, pa, npe, npa, ve, va, ge, ga = _prepare(expected, actual, n_bgroups)
    same_group = ge[:, None] == ga[None, :]

    def cdist(x, y):
        d = x[:, :, None, :] - y[:, None, :, :]
        return jnp.sqrt(jnp.sum(d * d, axis=-1))

    valid = same_group[None]
    dg = jnp.where(valid, cdist(pe, pa), jnp.inf)
    dn = jnp.where(valid, cdist(npe, npa), jnp.inf)
    dv = cdist(ve, va)

    order = jnp.argsort(dg, axis=-1)
    dg_s = jnp.take_along_axis(dg, order, axis=-1)[..., :k]
    dv_s = jnp.take_along_axis(dv, order, axis=-1)[..., :k]
    dn_s = jnp.sort(dn, axis=-1)[..., :k]
    denom = math.sqrt(F)
    return dg_s.mean() / denom, dn_s.mean() / denom, dv_s.mean() / denom


if __name__ == "__main__":
    B, F, J = 4, 8, 16
    n_bgroups, k = 2, 3

    key = jax.random.PRNGKey(0)
    k1, k2 = jax.random.split(key)

    # each joint carries a one-hot body-group label in features [3:]
    groups = jnp.tile(jnp.arange(n_bgroups), J // n_bgroups)                # (J,)
    onehot = jax.nn.one_hot(groups, n_bgroups, dtype=jnp.float32)           # (J, G)
    oh = jnp.broadcast_to(onehot, (B, F, J, n_bgroups))

    pos_e = jax.random.normal(k1, (B, F, J, 3), dtype=jnp.float32)
    pos_a = jax.random.normal(k2, (B, F, J, 3), dtype=jnp.float32)
    expected = jnp.concatenate([pos_e, oh], axis=-1)                        # (B, F, J, 5)
    actual = jnp.concatenate([pos_a, oh], axis=-1)

    rg, rn, rv = knn_loss_ref(expected, actual, n_bgroups, k)

    # auto-picked block batch (R <= 128; >= 2 grid steps on multi-TC chips)
    lg, ln, lv = knn_loss(expected, actual, n_bgroups, k)
    jax.block_until_ready((lg, ln, lv))
    np.testing.assert_allclose(np.array(lg), np.array(rg), rtol=5e-4, atol=1e-5)
    np.testing.assert_allclose(np.array(ln), np.array(rn), rtol=5e-4, atol=1e-5)
    np.testing.assert_allclose(np.array(lv), np.array(rv), rtol=5e-4, atol=1e-5)

    # explicit multi-step grid path (2 batches per step -> 2 grid steps)
    lg2, ln2, lv2 = knn_loss(expected, actual, n_bgroups, k, block_batch=2)
    jax.block_until_ready((lg2, ln2, lv2))
    np.testing.assert_allclose(np.array(lg2), np.array(rg), rtol=5e-4, atol=1e-5)
    np.testing.assert_allclose(np.array(ln2), np.array(rn), rtol=5e-4, atol=1e-5)
    np.testing.assert_allclose(np.array(lv2), np.array(rv), rtol=5e-4, atol=1e-5)

    print("KERNEL_OK")
</pallas_src>

<mosaic_0001>
module attributes {stable_mosaic.version = 11 : i64} {
  func.func @_knn_kernel(%arg0: i32, %arg1: memref<1x64x24xf32, #tpu.memory_space<vmem>>, %arg2: memref<1x64x24xf32, #tpu.memory_space<vmem>>, %arg3: memref<1x64x24xf32, #tpu.memory_space<vmem>>, %arg4: memref<1x64x24xf32, #tpu.memory_space<vmem>>, %arg5: memref<1x64x24xf32, #tpu.memory_space<vmem>>, %arg6: memref<1x64x24xf32, #tpu.memory_space<vmem>>, %arg7: memref<64x1xi32, #tpu.memory_space<vmem>>, %arg8: memref<1x64xi32, #tpu.memory_space<vmem>>, %arg9: memref<1x64x3xf32, #tpu.memory_space<vmem>>) attributes {dimension_semantics = [#tpu.dimension_semantics<parallel>], iteration_bounds = array<i64: 1>, scalar_prefetch = 0 : i64, scratch_operands = 0 : i64, tpu.core_type = #tpu.core_type<tc>, window_params = [{transform_indices = @transform_0, window_bounds = array<i64: 1, 64, 24>}, {transform_indices = @transform_1, window_bounds = array<i64: 1, 64, 24>}, {transform_indices = @transform_2, window_bounds = array<i64: 1, 64, 24>}, {transform_indices = @transform_3, window_bounds = array<i64: 1, 64, 24>}, {transform_indices = @transform_4, window_bounds = array<i64: 1, 64, 24>}, {transform_indices = @transform_5, window_bounds = array<i64: 1, 64, 24>}, {pipeline_mode = #tpu.pipeline_mode<synchronous>, transform_indices = @transform_6, window_bounds = array<i64: 64, 1>}, {pipeline_mode = #tpu.pipeline_mode<synchronous>, transform_indices = @transform_7, window_bounds = array<i64: 1, 64>}, {transform_indices = @transform_8, window_bounds = array<i64: 1, 64, 3>}]} {
    %c0 = arith.constant 0 : index
    %c0_0 = arith.constant 0 : index
    %c0_1 = arith.constant 0 : index
    %0 = vector.load %arg3[%c0, %c0_0, %c0_1] : memref<1x64x24xf32, #tpu.memory_space<vmem>>, vector<1x64x24xf32>
    %1 = vector.shape_cast %0 : vector<1x64x24xf32> to vector<64x24xf32>
    %c0_2 = arith.constant 0 : index
    %c0_3 = arith.constant 0 : index
    %c0_4 = arith.constant 0 : index
    %2 = vector.load %arg6[%c0_2, %c0_3, %c0_4] : memref<1x64x24xf32, #tpu.memory_space<vmem>>, vector<1x64x24xf32>
    %3 = vector.shape_cast %2 : vector<1x64x24xf32> to vector<64x24xf32>
    %cst = arith.constant dense<0.000000e+00> : vector<64x64xf32>
    %4 = tpu.matmul %1, %3, %cst {dimension_numbers = #tpu.dot_dimension_numbers<[1], [1], [0], [0], [0, 0, 1, 0], [], []>} : vector<64x24xf32>, vector<64x24xf32>, vector<64x64xf32> -> vector<64x64xf32>
    %5 = arith.mulf %1, %1 : vector<64x24xf32>
    %cst_5 = arith.constant dense<0.000000e+00> : vector<64xf32>
    %6 = vector.multi_reduction <add>, %5, %cst_5 [1] : vector<64x24xf32> to vector<64xf32>
    %7 = vector.shape_cast %6 : vector<64xf32> to vector<64x1xf32>
    %cst_6 = arith.constant 1.000000e+00 : f32
    %8 = vector.broadcast %cst_6 : f32 to vector<1x24xf32>
    %9 = arith.mulf %3, %3 : vector<64x24xf32>
    %cst_7 = arith.constant dense<0.000000e+00> : vector<1x64xf32>
    %10 = tpu.matmul %8, %9, %cst_7 {dimension_numbers = #tpu.dot_dimension_numbers<[1], [1], [0], [0], [0, 0, 1, 0], [], []>} : vector<1x24xf32>, vector<64x24xf32>, vector<1x64xf32> -> vector<1x64xf32>
    %11 = vector.broadcast %7 : vector<64x1xf32> to vector<64x64xf32>
    %12 = vector.broadcast %10 : vector<1x64xf32> to vector<64x64xf32>
    %13 = arith.addf %11, %12 : vector<64x64xf32>
    %cst_8 = arith.constant 2.000000e+00 : f32
    %14 = vector.broadcast %cst_8 : f32 to vector<64x64xf32>
    %15 = arith.mulf %14, %4 : vector<64x64xf32>
    %16 = arith.subf %13, %15 : vector<64x64xf32>
    %cst_9 = arith.constant 0.000000e+00 : f32
    %cst_10 = arith.constant 1.000000e+30 : f32
    %17 = vector.broadcast %cst_9 : f32 to vector<64x64xf32>
    %18 = arith.maximumf %17, %16 : vector<64x64xf32>
    %19 = vector.broadcast %cst_10 : f32 to vector<64x64xf32>
    %20 = arith.minimumf %19, %18 : vector<64x64xf32>
    %c0_11 = arith.constant 0 : index
    %c0_12 = arith.constant 0 : index
    %c0_13 = arith.constant 0 : index
    %21 = vector.load %arg1[%c0_11, %c0_12, %c0_13] : memref<1x64x24xf32, #tpu.memory_space<vmem>>, vector<1x64x24xf32>
    %22 = vector.shape_cast %21 : vector<1x64x24xf32> to vector<64x24xf32>
    %c0_14 = arith.constant 0 : index
    %c0_15 = arith.constant 0 : index
    %c0_16 = arith.constant 0 : index
    %23 = vector.load %arg4[%c0_14, %c0_15, %c0_16] : memref<1x64x24xf32, #tpu.memory_space<vmem>>, vector<1x64x24xf32>
    %24 = vector.shape_cast %23 : vector<1x64x24xf32> to vector<64x24xf32>
    %cst_17 = arith.constant dense<0.000000e+00> : vector<64x64xf32>
    %25 = tpu.matmul %22, %24, %cst_17 {dimension_numbers = #tpu.dot_dimension_numbers<[1], [1], [0], [0], [0, 0, 1, 0], [], []>} : vector<64x24xf32>, vector<64x24xf32>, vector<64x64xf32> -> vector<64x64xf32>
    %26 = arith.mulf %22, %22 : vector<64x24xf32>
    %cst_18 = arith.constant dense<0.000000e+00> : vector<64xf32>
    %27 = vector.multi_reduction <add>, %26, %cst_18 [1] : vector<64x24xf32> to vector<64xf32>
    %28 = vector.shape_cast %27 : vector<64xf32> to vector<64x1xf32>
    %cst_19 = arith.constant 1.000000e+00 : f32
    %29 = vector.broadcast %cst_19 : f32 to vector<1x24xf32>
    %30 = arith.mulf %24, %24 : vector<64x24xf32>
    %cst_20 = arith.constant dense<0.000000e+00> : vector<1x64xf32>
    %31 = tpu.matmul %29, %30, %cst_20 {dimension_numbers = #tpu.dot_dimension_numbers<[1], [1], [0], [0], [0, 0, 1, 0], [], []>} : vector<1x24xf32>, vector<64x24xf32>, vector<1x64xf32> -> vector<1x64xf32>
    %32 = vector.broadcast %28 : vector<64x1xf32> to vector<64x64xf32>
    %33 = vector.broadcast %31 : vector<1x64xf32> to vector<64x64xf32>
    %34 = arith.addf %32, %33 : vector<64x64xf32>
    %cst_21 = arith.constant 2.000000e+00 : f32
    %35 = vector.broadcast %cst_21 : f32 to vector<64x64xf32>
    %36 = arith.mulf %35, %25 : vector<64x64xf32>
    %37 = arith.subf %34, %36 : vector<64x64xf32>
    %cst_22 = arith.constant 0.000000e+00 : f32
    %cst_23 = arith.constant 1.000000e+30 : f32
    %38 = vector.broadcast %cst_22 : f32 to vector<64x64xf32>
    %39 = arith.maximumf %38, %37 : vector<64x64xf32>
    %40 = vector.broadcast %cst_23 : f32 to vector<64x64xf32>
    %41 = arith.minimumf %40, %39 : vector<64x64xf32>
    %c0_24 = arith.constant 0 : index
    %c0_25 = arith.constant 0 : index
    %42 = vector.load %arg7[%c0_24, %c0_25] : memref<64x1xi32, #tpu.memory_space<vmem>>, vector<64x1xi32>
    %c0_26 = arith.constant 0 : index
    %c0_27 = arith.constant 0 : index
    %43 = vector.load %arg8[%c0_26, %c0_27] : memref<1x64xi32, #tpu.memory_space<vmem>>, vector<1x64xi32>
    %44 = vector.broadcast %42 : vector<64x1xi32> to vector<64x64xi32>
    %45 = vector.broadcast %43 : vector<1x64xi32> to vector<64x64xi32>
    %46 = arith.cmpi eq, %44, %45 : vector<64x64xi32>
    %47 = tpu.iota {dimensions = array<i32: 1>} : vector<64x64xi32>
    %48 = tpu.bitcast %41 : vector<64x64xf32> -> vector<64x64xi32>
    %c-64_i32 = arith.constant -64 : i32
    %49 = vector.broadcast %c-64_i32 : i32 to vector<64x64xi32>
    %50 = arith.andi %48, %49 : vector<64x64xi32>
    %c8388608_i32 = arith.constant 8388608 : i32
    %51 = vector.broadcast %c8388608_i32 : i32 to vector<64x64xi32>
    %52 = arith.addi %47, %51 : vector<64x64xi32>
    %53 = arith.addi %50, %52 : vector<64x64xi32>
    %54 = tpu.bitcast %53 : vector<64x64xi32> -> vector<64x64xf32>
    %cst_28 = arith.constant 3.40282347E+38 : f32
    %55 = vector.broadcast %cst_28 : f32 to vector<64x64xf32>
    %56 = arith.select %46, %54, %55 : vector<64x64xi1>, vector<64x64xf32>
    %cst_29 = arith.constant 0.000000e+00 : f32
    %57 = vector.broadcast %cst_29 : f32 to vector<64x1xf32>
    %cst_30 = arith.constant 0.000000e+00 : f32
    %58 = vector.broadcast %cst_30 : f32 to vector<64x1xf32>
    %cst_31 = arith.constant dense<0x7F800000> : vector<64xf32>
    %59 = vector.multi_reduction <minimumf>, %56, %cst_31 [1] : vector<64x64xf32> to vector<64xf32>
    %60 = vector.shape_cast %59 : vector<64xf32> to vector<64x1xf32>
    %61 = tpu.bitcast %60 : vector<64x1xf32> -> vector<64x1xi32>
    %c8388608_i32_32 = arith.constant 8388608 : i32
    %62 = vector.broadcast %c8388608_i32_32 : i32 to vector<64x1xi32>
    %63 = arith.subi %61, %62 : vector<64x1xi32>
    %c-64_i32_33 = arith.constant -64 : i32
    %64 = vector.broadcast %c-64_i32_33 : i32 to vector<64x1xi32>
    %65 = arith.andi %63, %64 : vector<64x1xi32>
    %66 = tpu.bitcast %65 : vector<64x1xi32> -> vector<64x1xf32>
    %67 = math.sqrt %66 : vector<64x1xf32>
    %68 = arith.addf %57, %67 : vector<64x1xf32>
    %69 = vector.broadcast %60 : vector<64x1xf32> to vector<64x64xf32>
    %70 = arith.cmpf oeq, %56, %69 : vector<64x64xf32>
    %cst_34 = arith.constant 0.000000e+00 : f32
    %71 = vector.broadcast %cst_34 : f32 to vector<64x64xf32>
    %72 = arith.select %70, %20, %71 : vector<64x64xi1>, vector<64x64xf32>
    %cst_35 = arith.constant dense<0.000000e+00> : vector<64xf32>
    %73 = vector.multi_reduction <add>, %72, %cst_35 [1] : vector<64x64xf32> to vector<64xf32>
    %74 = vector.shape_cast %73 : vector<64xf32> to vector<64x1xf32>
    %75 = math.sqrt %74 : vector<64x1xf32>
    %76 = arith.addf %58, %75 : vector<64x1xf32>
    %cst_36 = arith.constant 3.40282347E+38 : f32
    %77 = vector.broadcast %cst_36 : f32 to vector<64x64xf32>
    %78 = arith.select %70, %77, %56 : vector<64x64xi1>, vector<64x64xf32>
    %cst_37 = arith.constant dense<0x7F800000> : vector<64xf32>
    %79 = vector.multi_reduction <minimumf>, %78, %cst_37 [1] : vector<64x64xf32> to vector<64xf32>
    %80 = vector.shape_cast %79 : vector<64xf32> to vector<64x1xf32>
    %81 = tpu.bitcast %80 : vector<64x1xf32> -> vector<64x1xi32>
    %c8388608_i32_38 = arith.constant 8388608 : i32
    %82 = vector.broadcast %c8388608_i32_38 : i32 to vector<64x1xi32>
    %83 = arith.subi %81, %82 : vector<64x1xi32>
    %c-64_i32_39 = arith.constant -64 : i32
    %84 = vector.broadcast %c-64_i32_39 : i32 to vector<64x1xi32>
    %85 = arith.andi %83, %84 : vector<64x1xi32>
    %86 = tpu.bitcast %85 : vector<64x1xi32> -> vector<64x1xf32>
    %87 = math.sqrt %86 : vector<64x1xf32>
    %88 = arith.addf %68, %87 : vector<64x1xf32>
    %89 = vector.broadcast %80 : vector<64x1xf32> to vector<64x64xf32>
    %90 = arith.cmpf oeq, %78, %89 : vector<64x64xf32>
    %cst_40 = arith.constant 0.000000e+00 : f32
    %91 = vector.broadcast %cst_40 : f32 to vector<64x64xf32>
    %92 = arith.select %90, %20, %91 : vector<64x64xi1>, vector<64x64xf32>
    %cst_41 = arith.constant dense<0.000000e+00> : vector<64xf32>
    %93 = vector.multi_reduction <add>, %92, %cst_41 [1] : vector<64x64xf32> to vector<64xf32>
    %94 = vector.shape_cast %93 : vector<64xf32> to vector<64x1xf32>
    %95 = math.sqrt %94 : vector<64x1xf32>
    %96 = arith.addf %76, %95 : vector<64x1xf32>
    %cst_42 = arith.constant 3.40282347E+38 : f32
    %97 = vector.broadcast %cst_42 : f32 to vector<64x64xf32>
    %98 = arith.select %90, %97, %78 : vector<64x64xi1>, vector<64x64xf32>
    %cst_43 = arith.constant dense<0x7F800000> : vector<64xf32>
    %99 = vector.multi_reduction <minimumf>, %98, %cst_43 [1] : vector<64x64xf32> to vector<64xf32>
    %100 = vector.shape_cast %99 : vector<64xf32> to vector<64x1xf32>
    %101 = tpu.bitcast %100 : vector<64x1xf32> -> vector<64x1xi32>
    %c8388608_i32_44 = arith.constant 8388608 : i32
    %102 = vector.broadcast %c8388608_i32_44 : i32 to vector<64x1xi32>
    %103 = arith.subi %101, %102 : vector<64x1xi32>
    %c-64_i32_45 = arith.constant -64 : i32
    %104 = vector.broadcast %c-64_i32_45 : i32 to vector<64x1xi32>
    %105 = arith.andi %103, %104 : vector<64x1xi32>
    %106 = tpu.bitcast %105 : vector<64x1xi32> -> vector<64x1xf32>
    %107 = math.sqrt %106 : vector<64x1xf32>
    %108 = arith.addf %88, %107 : vector<64x1xf32>
    %109 = vector.broadcast %100 : vector<64x1xf32> to vector<64x64xf32>
    %110 = arith.cmpf oeq, %98, %109 : vector<64x64xf32>
    %cst_46 = arith.constant 0.000000e+00 : f32
    %111 = vector.broadcast %cst_46 : f32 to vector<64x64xf32>
    %112 = arith.select %110, %20, %111 : vector<64x64xi1>, vector<64x64xf32>
    %cst_47 = arith.constant dense<0.000000e+00> : vector<64xf32>
    %113 = vector.multi_reduction <add>, %112, %cst_47 [1] : vector<64x64xf32> to vector<64xf32>
    %114 = vector.shape_cast %113 : vector<64xf32> to vector<64x1xf32>
    %115 = math.sqrt %114 : vector<64x1xf32>
    %116 = arith.addf %96, %115 : vector<64x1xf32>
    %c0_48 = arith.constant 0 : index
    %c0_49 = arith.constant 0 : index
    %c0_50 = arith.constant 0 : index
    %117 = vector.load %arg2[%c0_48, %c0_49, %c0_50] : memref<1x64x24xf32, #tpu.memory_space<vmem>>, vector<1x64x24xf32>
    %118 = vector.shape_cast %117 : vector<1x64x24xf32> to vector<64x24xf32>
    %c0_51 = arith.constant 0 : index
    %c0_52 = arith.constant 0 : index
    %c0_53 = arith.constant 0 : index
    %119 = vector.load %arg5[%c0_51, %c0_52, %c0_53] : memref<1x64x24xf32, #tpu.memory_space<vmem>>, vector<1x64x24xf32>
    %120 = vector.shape_cast %119 : vector<1x64x24xf32> to vector<64x24xf32>
    %cst_54 = arith.constant dense<0.000000e+00> : vector<64x64xf32>
    %121 = tpu.matmul %118, %120, %cst_54 {dimension_numbers = #tpu.dot_dimension_numbers<[1], [1], [0], [0], [0, 0, 1, 0], [], []>} : vector<64x24xf32>, vector<64x24xf32>, vector<64x64xf32> -> vector<64x64xf32>
    %122 = arith.mulf %118, %118 : vector<64x24xf32>
    %cst_55 = arith.constant dense<0.000000e+00> : vector<64xf32>
    %123 = vector.multi_reduction <add>, %122, %cst_55 [1] : vector<64x24xf32> to vector<64xf32>
    %124 = vector.shape_cast %123 : vector<64xf32> to vector<64x1xf32>
    %cst_56 = arith.constant 1.000000e+00 : f32
    %125 = vector.broadcast %cst_56 : f32 to vector<1x24xf32>
    %126 = arith.mulf %120, %120 : vector<64x24xf32>
    %cst_57 = arith.constant dense<0.000000e+00> : vector<1x64xf32>
    %127 = tpu.matmul %125, %126, %cst_57 {dimension_numbers = #tpu.dot_dimension_numbers<[1], [1], [0], [0], [0, 0, 1, 0], [], []>} : vector<1x24xf32>, vector<64x24xf32>, vector<1x64xf32> -> vector<1x64xf32>
    %128 = vector.broadcast %124 : vector<64x1xf32> to vector<64x64xf32>
    %129 = vector.broadcast %127 : vector<1x64xf32> to vector<64x64xf32>
    %130 = arith.addf %128, %129 : vector<64x64xf32>
    %cst_58 = arith.constant 2.000000e+00 : f32
    %131 = vector.broadcast %cst_58 : f32 to vector<64x64xf32>
    %132 = arith.mulf %131, %121 : vector<64x64xf32>
    %133 = arith.subf %130, %132 : vector<64x64xf32>
    %cst_59 = arith.constant 0.000000e+00 : f32
    %cst_60 = arith.constant 1.000000e+30 : f32
    %134 = vector.broadcast %cst_59 : f32 to vector<64x64xf32>
    %135 = arith.maximumf %134, %133 : vector<64x64xf32>
    %136 = vector.broadcast %cst_60 : f32 to vector<64x64xf32>
    %137 = arith.minimumf %136, %135 : vector<64x64xf32>
    %c0_61 = arith.constant 0 : index
    %c0_62 = arith.constant 0 : index
    %138 = vector.load %arg7[%c0_61, %c0_62] : memref<64x1xi32, #tpu.memory_space<vmem>>, vector<64x1xi32>
    %c0_63 = arith.constant 0 : index
    %c0_64 = arith.constant 0 : index
    %139 = vector.load %arg8[%c0_63, %c0_64] : memref<1x64xi32, #tpu.memory_space<vmem>>, vector<1x64xi32>
    %140 = vector.broadcast %138 : vector<64x1xi32> to vector<64x64xi32>
    %141 = vector.broadcast %139 : vector<1x64xi32> to vector<64x64xi32>
    %142 = arith.cmpi eq, %140, %141 : vector<64x64xi32>
    %143 = tpu.iota {dimensions = array<i32: 1>} : vector<64x64xi32>
    %144 = tpu.bitcast %137 : vector<64x64xf32> -> vector<64x64xi32>
    %c-64_i32_65 = arith.constant -64 : i32
    %145 = vector.broadcast %c-64_i32_65 : i32 to vector<64x64xi32>
    %146 = arith.andi %144, %145 : vector<64x64xi32>
    %c8388608_i32_66 = arith.constant 8388608 : i32
    %147 = vector.broadcast %c8388608_i32_66 : i32 to vector<64x64xi32>
    %148 = arith.addi %143, %147 : vector<64x64xi32>
    %149 = arith.addi %146, %148 : vector<64x64xi32>
    %150 = tpu.bitcast %149 : vector<64x64xi32> -> vector<64x64xf32>
    %cst_67 = arith.constant 3.40282347E+38 : f32
    %151 = vector.broadcast %cst_67 : f32 to vector<64x64xf32>
    %152 = arith.select %142, %150, %151 : vector<64x64xi1>, vector<64x64xf32>
    %cst_68 = arith.constant 0.000000e+00 : f32
    %153 = vector.broadcast %cst_68 : f32 to vector<64x1xf32>
    %cst_69 = arith.constant dense<0x7F800000> : vector<64xf32>
    %154 = vector.multi_reduction <minimumf>, %152, %cst_69 [1] : vector<64x64xf32> to vector<64xf32>
    %155 = vector.shape_cast %154 : vector<64xf32> to vector<64x1xf32>
    %156 = tpu.bitcast %155 : vector<64x1xf32> -> vector<64x1xi32>
    %c8388608_i32_70 = arith.constant 8388608 : i32
    %157 = vector.broadcast %c8388608_i32_70 : i32 to vector<64x1xi32>
    %158 = arith.subi %156, %157 : vector<64x1xi32>
    %c-64_i32_71 = arith.constant -64 : i32
    %159 = vector.broadcast %c-64_i32_71 : i32 to vector<64x1xi32>
    %160 = arith.andi %158, %159 : vector<64x1xi32>
    %161 = tpu.bitcast %160 : vector<64x1xi32> -> vector<64x1xf32>
    %162 = math.sqrt %161 : vector<64x1xf32>
    %163 = arith.addf %153, %162 : vector<64x1xf32>
    %164 = vector.broadcast %155 : vector<64x1xf32> to vector<64x64xf32>
    %165 = arith.cmpf oeq, %152, %164 : vector<64x64xf32>
    %cst_72 = arith.constant 3.40282347E+38 : f32
    %166 = vector.broadcast %cst_72 : f32 to vector<64x64xf32>
    %167 = arith.select %165, %166, %152 : vector<64x64xi1>, vector<64x64xf32>
    %cst_73 = arith.constant dense<0x7F800000> : vector<64xf32>
    %168 = vector.multi_reduction <minimumf>, %167, %cst_73 [1] : vector<64x64xf32> to vector<64xf32>
    %169 = vector.shape_cast %168 : vector<64xf32> to vector<64x1xf32>
    %170 = tpu.bitcast %169 : vector<64x1xf32> -> vector<64x1xi32>
    %c8388608_i32_74 = arith.constant 8388608 : i32
    %171 = vector.broadcast %c8388608_i32_74 : i32 to vector<64x1xi32>
    %172 = arith.subi %170, %171 : vector<64x1xi32>
    %c-64_i32_75 = arith.constant -64 : i32
    %173 = vector.broadcast %c-64_i32_75 : i32 to vector<64x1xi32>
    %174 = arith.andi %172, %173 : vector<64x1xi32>
    %175 = tpu.bitcast %174 : vector<64x1xi32> -> vector<64x1xf32>
    %176 = math.sqrt %175 : vector<64x1xf32>
    %177 = arith.addf %163, %176 : vector<64x1xf32>
    %178 = vector.broadcast %169 : vector<64x1xf32> to vector<64x64xf32>
    %179 = arith.cmpf oeq, %167, %178 : vector<64x64xf32>
    %cst_76 = arith.constant 3.40282347E+38 : f32
    %180 = vector.broadcast %cst_76 : f32 to vector<64x64xf32>
    %181 = arith.select %179, %180, %167 : vector<64x64xi1>, vector<64x64xf32>
    %cst_77 = arith.constant dense<0x7F800000> : vector<64xf32>
    %182 = vector.multi_reduction <minimumf>, %181, %cst_77 [1] : vector<64x64xf32> to vector<64xf32>
    %183 = vector.shape_cast %182 : vector<64xf32> to vector<64x1xf32>
    %184 = tpu.bitcast %183 : vector<64x1xf32> -> vector<64x1xi32>
    %c8388608_i32_78 = arith.constant 8388608 : i32
    %185 = vector.broadcast %c8388608_i32_78 : i32 to vector<64x1xi32>
    %186 = arith.subi %184, %185 : vector<64x1xi32>
    %c-64_i32_79 = arith.constant -64 : i32
    %187 = vector.broadcast %c-64_i32_79 : i32 to vector<64x1xi32>
    %188 = arith.andi %186, %187 : vector<64x1xi32>
    %189 = tpu.bitcast %188 : vector<64x1xi32> -> vector<64x1xf32>
    %190 = math.sqrt %189 : vector<64x1xf32>
    %191 = arith.addf %177, %190 : vector<64x1xf32>
    %192 = tpu.concatenate %108, %191, %116 in 1 : vector<64x1xf32>, vector<64x1xf32>, vector<64x1xf32> -> vector<64x3xf32>
    %c0_80 = arith.constant 0 : index
    %c0_81 = arith.constant 0 : index
    %c0_82 = arith.constant 0 : index
    %193 = vector.load %arg9[%c0_80, %c0_81, %c0_82] : memref<1x64x3xf32, #tpu.memory_space<vmem>>, vector<1x64x3xf32>
    %194 = vector.shape_cast %193 : vector<1x64x3xf32> to vector<64x3xf32>
    %195 = vector.shape_cast %192 : vector<64x3xf32> to vector<1x64x3xf32>
    tpu.vector_store %arg9[%c0_80, %c0_81, %c0_82], %195 {strides = array<i32>} : memref<1x64x3xf32, #tpu.memory_space<vmem>>, vector<1x64x3xf32>,
    return
  }
  func.func @transform_0(%arg0: i32) -> (i32, i32, i32) {
    %c0_i32 = arith.constant 0 : i32
    %c0_i32_0 = arith.constant 0 : i32
    %c0_i32_1 = arith.constant 0 : i32
    return %arg0, %c0_i32, %c0_i32_0 : i32, i32, i32
  }
  func.func @transform_1(%arg0: i32) -> (i32, i32, i32) {
    %c0_i32 = arith.constant 0 : i32
    %c0_i32_0 = arith.constant 0 : i32
    %c0_i32_1 = arith.constant 0 : i32
    return %arg0, %c0_i32, %c0_i32_0 : i32, i32, i32
  }
  func.func @transform_2(%arg0: i32) -> (i32, i32, i32) {
    %c0_i32 = arith.constant 0 : i32
    %c0_i32_0 = arith.constant 0 : i32
    %c0_i32_1 = arith.constant 0 : i32
    return %arg0, %c0_i32, %c0_i32_0 : i32, i32, i32
  }
  func.func @transform_3(%arg0: i32) -> (i32, i32, i32) {
    %c0_i32 = arith.constant 0 : i32
    %c0_i32_0 = arith.constant 0 : i32
    %c0_i32_1 = arith.constant 0 : i32
    return %arg0, %c0_i32, %c0_i32_0 : i32, i32, i32
  }
  func.func @transform_4(%arg0: i32) -> (i32, i32, i32) {
    %c0_i32 = arith.constant 0 : i32
    %c0_i32_0 = arith.constant 0 : i32
    %c0_i32_1 = arith.constant 0 : i32
    return %arg0, %c0_i32, %c0_i32_0 : i32, i32, i32
  }
  func.func @transform_5(%arg0: i32) -> (i32, i32, i32) {
    %c0_i32 = arith.constant 0 : i32
    %c0_i32_0 = arith.constant 0 : i32
    %c0_i32_1 = arith.constant 0 : i32
    return %arg0, %c0_i32, %c0_i32_0 : i32, i32, i32
  }
  func.func @transform_6(%arg0: i32) -> (i32, i32) {
    %c0_i32 = arith.constant 0 : i32
    %c0_i32_0 = arith.constant 0 : i32
    %c0_i32_1 = arith.constant 0 : i32
    return %c0_i32, %c0_i32_0 : i32, i32
  }
  func.func @transform_7(%arg0: i32) -> (i32, i32) {
    %c0_i32 = arith.constant 0 : i32
    %c0_i32_0 = arith.constant 0 : i32
    %c0_i32_1 = arith.constant 0 : i32
    return %c0_i32, %c0_i32_0 : i32, i32
  }
  func.func @transform_8(%arg0: i32) -> (i32, i32, i32) {
    %c0_i32 = arith.constant 0 : i32
    %c0_i32_0 = arith.constant 0 : i32
    %c0_i32_1 = arith.constant 0 : i32
    return %arg0, %c0_i32, %c0_i32_0 : i32, i32, i32
  }
}

</mosaic_0001>

<bundles_post_ra>
// kernel: tpu_custom_call.1
= control target key start
LH: loop header
LB: loop body
LE: loop exit
PB: predicated region body
PF: predicated region fallthrough
CT: control target
= control target key end

     0   :  { %vm45_vm0 = vcmask 195584   ;;  %v2925_v3 = vmov 0.0|0.0   ;;  %vm2926_vm2 = vmmov 0   ;;  %v2927_v4 = vmov 0.0   ;;  %s4871_s5 = inlined_call_operand.vmem [shape: f32[1,64,24], index: 5, kind: input, shape index: {}]   ;;  %s4872_s2 = inlined_call_operand.vmem [shape: f32[1,64,24], index: 2, kind: input, shape index: {}]   ;;  %s4873_s0 = inlined_call_operand.vmem [shape: f32[1,64,24], index: 0, kind: input, shape index: {}]   ;;  %s4874_s3 = inlined_call_operand.vmem [shape: f32[1,64,24], index: 3, kind: input, shape index: {}]   ;;  %s4875_s6 = inlined_call_operand.vmem [shape: s32[64,1], index: 6, kind: input, shape index: {}]   ;;  %s4876_s4 = inlined_call_operand.vmem [shape: f32[1,64,24], index: 4, kind: input, shape index: {}]   ;;  %s4877_s1 = inlined_call_operand.vmem [shape: f32[1,64,24], index: 1, kind: input, shape index: {}]   ;;  %s4878_s7 = inlined_call_operand.vmem [shape: s32[1,64], index: 7, kind: input, shape index: {}]   ;;  %s4879_s8 = inlined_call_operand.vmem [shape: f32[1,64,3], index: 8, kind: output, shape index: {}]  }
   0x1   :  { %v37_v0 = vld [vmem:[%s4871_s5] sm:$0xff]  ;;  %v38_v1 = vld [vmem:[%s4871_s5 + $0x8] sm:$0xff]  ;;  %vm2983_vm1 = vmpackc.low %vm45_vm0, %vm45_vm0  ;;  %2678 = vmatprep.subr.bf16.mxu1 %v2925_v3  ;;  %2557 = vmatprep.mubr.msk.f32.mxu1 %vm2926_vm2, %v2927_v4  ;;  %v2928_v10 = vmov 0   ;;  %vm815_vm3 = vcmask 523264  }
   0x2   :  { %v2654_v5 = vpack.c.bf16 %v38_v1, %v37_v0  ;;  %v231_v6 = vmul.f32 %v37_v0, %v37_v0  ;;  %v232_v7 = vmul.f32 %v38_v1, %v38_v1  ;;  %v39_v8 = vld [vmem:[%s4871_s5 + $0x10] sm:$0xff]  ;;  %v40_v9 = vld [vmem:[%s4871_s5 + $0x18] sm:$0xff]  ;;  %2780 = vset.pattern.permute.xlu1 %v2928_v10  ;;  %2779 = vset.pattern.permute.xlu0 %v2928_v10  ;;  %v3001_v13 = vld [vmem:[%s4872_s2] sm:$0xff]  ;;  %v2929_v0 = vmov 1.0  }
   0x3   :  { %v2660_v11 = vpack.c.bf16 %v40_v9, %v39_v8  ;;  %2529 = vmatprep.mubr.msk.f32.mxu0 %vm45_vm0, %v3001_v13  ;;  %v233_v14 = vmul.f32 %v39_v8, %v39_v8  ;;  %v234_v15 = vmul.f32 %v40_v9, %v40_v9  ;;  %v41_v16 = vld [vmem:[%s4871_s5 + $0x20] sm:$0xff]  ;;  %v42_v17 = vld [vmem:[%s4871_s5 + $0x28] sm:$0xff]  ;;  %v3021_v20 = vld [vmem:[%s4873_s0 + $0x10] sm:$0xff] }
   0x4   :  { %2656 = vmatprep.subr.msk.bf16.mxu0 %vm2983_vm1, %v2654_v5  ;;  %v2679_v12 = vpack.c.bf16 %v232_v7, %v231_v6  ;;  %v2666_v19 = vpack.c.bf16 %v42_v17, %v41_v16  ;;  %v3026_v21 = vld [vmem:[%s4873_s0 + $0x18] sm:$0xff]  ;;  %v3031_v22 = vld [vmem:[%s4873_s0] sm:$0xff]  ;;  %v551_v23 = vmul.f32 %v3021_v20, %v3021_v20  ;;  %v235_v26 = vmul.f32 %v41_v16, %v41_v16  ;;  %v43_v29 = vld [vmem:[%s4871_s5 + $0x30] sm:$0xff] }
   0x5   :  { %2659 = vmatpush3.bf16.xpose.msk.msra.mxu0 %vm2983_vm1, %v2654_v5  ;;  %v2683_v18 = vpack.c.bf16 %v234_v15, %v233_v14  ;;  %v552_v24 = vmul.f32 %v3026_v21, %v3026_v21  ;;  %v549_v25 = vmul.f32 %v3031_v22, %v3031_v22  ;;  %v236_v27 = vmul.f32 %v42_v17, %v42_v17  ;;  %v44_v30 = vld [vmem:[%s4871_s5 + $0x38] sm:$0xff]  ;;  %v3056_v31 = vld [vmem:[%s4873_s0 + $0x28] sm:$0xff]  ;;  %v3077_v40 = vld [vmem:[%s4873_s0 + $0x20] sm:$0xff] }
   0x6   :  { %2681 = vmatpush3.bf16.xpose.msk.msra.mxu1 %vm2983_vm1, %v2679_v12  ;;  %2662 = vmatprep.subr.msk.bf16.mxu0 %vm2983_vm1, %v2660_v11  ;;  %v563_v28 = vsel %vm45_vm0, %v551_v23, 0.0  ;;  %v3061_v32 = vld [vmem:[%s4873_s0 + $0x8] sm:$0xff]  ;;  %v554_v34 = vmul.f32 %v3056_v31, %v3056_v31  ;;  %v2672_v38 = vpack.c.bf16 %v44_v30, %v43_v29  ;;  %v3072_v39 = vld [vmem:[%s4873_s0 + $0x38] sm:$0xff]  ;;  %v553_v44 = vmul.f32 %v3077_v40, %v3077_v40  ;;  %v388_v47 = vld [vmem:[%s4874_s3] sm:$0xff] }
   0x7   :  { %2682 = vmatprep.subr.bf16.mxu1 %v2925_v3  ;;  %564 = vadd.xlane.f32.xlu1 %v563_v28  ;;  %v566_v33 = vsel %vm45_vm0, %v552_v24, 0.0  ;;  %v557_v35 = vsel %vm45_vm0, %v549_v25, 0.0  ;;  %v550_v36 = vmul.f32 %v3061_v32, %v3061_v32  ;;  %v2687_v37 = vpack.c.bf16 %v236_v27, %v235_v26  ;;  %v389_v48 = vld [vmem:[%s4874_s3 + $0x8] sm:$0xff]  ;;  %v3101_v49 = vld [vmem:[%s4873_s0 + $0x30] sm:$0xff]  ;;  %v391_v59 = vld [vmem:[%s4874_s3 + $0x18] sm:$0xff] }
   0x8   :  { %558 = vadd.xlane.f32.xlu0 %v557_v35  ;;  %v572_v41 = vsel %vm45_vm0, %v554_v34, 0.0  ;;  %v556_v42 = vmul.f32 %v3072_v39, %v3072_v39  ;;  %v237_v45 = vmul.f32 %v43_v29, %v43_v29  ;;  %v238_v46 = vmul.f32 %v44_v30, %v44_v30  ;;  %v390_v58 = vld [vmem:[%s4874_s3 + $0x10] sm:$0xff]  ;;  %v3124_v60 = vld [vmem:[%s4872_s2 + $0x8] sm:$0xff]  ;;  %v3140_v1 = vld [vmem:[%s4872_s2 + $0x18] sm:$0xff] }
   0x9   :  { %v560_v43 = vsel %vm45_vm0, %v550_v36, 0.0  ;;  %v569_v51 = vsel %vm45_vm0, %v553_v44, 0.0  ;;  %v555_v52 = vmul.f32 %v3101_v49, %v3101_v49  ;;  %v2694_v54 = vpack.c.bf16 %v389_v48, %v388_v47  ;;  %v3131_v63 = vld [vmem:[%s4872_s2 + $0x10] sm:$0xff]  ;;  %v3149_v7 = vld [vmem:[%s4872_s2 + $0x20] sm:$0xff]  ;;  %v393_v9 = vld [vmem:[%s4874_s3 + $0x28] sm:$0xff] }
   0xa   :  { %v578_v50 = vsel %vm45_vm0, %v556_v42, 0.0  ;;  %v2691_v53 = vpack.c.bf16 %v238_v46, %v237_v45  ;;  %v581_v56 = vmul.f32 %v388_v47, %v388_v47  ;;  %v582_v57 = vmul.f32 %v389_v48, %v389_v48  ;;  %v392_v8 = vld [vmem:[%s4874_s3 + $0x20] sm:$0xff]  ;;  %v3169_v10 = vld [vmem:[%s4872_s2 + $0x28] sm:$0xff]  ;;  %v3177_v15 = vld [vmem:[%s4872_s2 + $0x30] sm:$0xff] }
   0xb   :  { %567 = vadd.xlane.f32.xlu1 %v566_v33  ;;  %v575_v55 = vsel %vm45_vm0, %v555_v52, 0.0  ;;  %v2700_v62 = vpack.c.bf16 %v391_v59, %v390_v58  ;;  %v583_v5 = vmul.f32 %v390_v58, %v390_v58  ;;  %v584_v6 = vmul.f32 %v391_v59, %v391_v59  ;;  %v3188_v16 = vld [vmem:[%s4872_s2 + $0x38] sm:$0xff]  ;;  %v729_v17 = vld [vmem:[%s4875_s6 + $0x10] sm:$0xff]  ;;  %v727_v28 = vld [vmem:[%s4875_s6] sm:$0xff] }
   0xc   :  { %561 = vadd.xlane.f32.xlu0 %v560_v43  ;;  %v2719_v61 = vpack.c.bf16 %v582_v57, %v581_v56  ;;  %v2706_v14 = vpack.c.bf16 %v393_v9, %v392_v8  ;;  %v394_v23 = vld [vmem:[%s4874_s3 + $0x30] sm:$0xff]  ;;  %v395_v24 = vld [vmem:[%s4874_s3 + $0x38] sm:$0xff]  ;;  %v731_v29 = vld [vmem:[%s4875_s6 + $0x20] sm:$0xff] }
   0xd   :  { %2665 = vmatpush3.bf16.xpose.msk.msra.mxu0 %vm2983_vm1, %v2660_v11  ;;  %v728_v11 = vld [vmem:[%s4875_s6 + $0x8] sm:$0xff]  ;;  %v2723_v12 = vpack.c.bf16 %v584_v6, %v583_v5  ;;  %v730_v25 = vld [vmem:[%s4875_s6 + $0x18] sm:$0xff]  ;;  %v2712_v27 = vpack.c.bf16 %v395_v24, %v394_v23  ;;  %v588_v30 = vmul.f32 %v395_v24, %v395_v24  ;;  %v1512_v33 = vld [vmem:[%s4876_s4] sm:$0xff] }
   0xe   :  { %2685 = vmatpush3.bf16.xpose.msk.msra.mxu1 %vm2983_vm1, %v2683_v18  ;;  %2668 = vmatprep.subr.msk.bf16.mxu0 %vm2983_vm1, %v2666_v19  ;;  %v585_v18 = vmul.f32 %v392_v8, %v392_v8  ;;  %v1513_v34 = vld [vmem:[%s4876_s4 + $0x8] sm:$0xff]  ;;  %v1514_v43 = vld [vmem:[%s4876_s4 + $0x10] sm:$0xff]  ;;  %v1515_v44 = vld [vmem:[%s4876_s4 + $0x18] sm:$0xff] }
   0xf   :  { %2686 = vmatprep.subr.bf16.mxu1 %v2925_v3  ;;  %573 = vadd.xlane.f32.xlu1 %v572_v41  ;;  %v732_v35 = vld [vmem:[%s4875_s6 + $0x28] sm:$0xff]  ;;  %v1705_v41 = vmul.f32 %v1512_v33, %v1512_v33  ;;  %v1706_v42 = vmul.f32 %v1513_v34, %v1513_v34  ;;  %v734_v45 = vld [vmem:[%s4875_s6 + $0x38] sm:$0xff]  ;;  %v2740_v47 = vpack.c.bf16 %v1515_v44, %v1514_v43  ;;  %v1506_v57 = vld [vmem:[%s4877_s1 + $0x10] sm:$0xff] }
  0x10   :  { %570 = vadd.xlane.f32.xlu0 %v569_v51  ;;  %v1707_v48 = vmul.f32 %v1514_v43, %v1514_v43  ;;  %v1517_v51 = vld [vmem:[%s4876_s4 + $0x28] sm:$0xff]  ;;  %v1675_v59 = vmul.f32 %v1506_v57, %v1506_v57 }
  0x11   :  { %v2759_v46 = vpack.c.bf16 %v1706_v42, %v1705_v41 }
  0x12   :  { %v1687_v5 = vsel %vm45_vm0, %v1675_v59, 0.0 }
  0x13   :  { %579 = vadd.xlane.f32.xlu1 %v578_v50  ;;  %v1708_v50 = vmul.f32 %v1515_v44, %v1515_v44 }
  0x14   :  { %576 = vadd.xlane.f32.xlu0 %v575_v55 }
  0x15   :  { %2671 = vmatpush3.bf16.xpose.msk.msra.mxu0 %vm2983_vm1, %v2666_v19  ;;  %v586_v19 = vmul.f32 %v393_v9, %v393_v9  ;;  %v1510_v9 = vld [vmem:[%s4877_s1 + $0x30] sm:$0xff] }
  0x16   :  { %2689 = vmatpush3.bf16.xpose.msk.msra.mxu1 %vm2983_vm1, %v2687_v37  ;;  %2674 = vmatprep.subr.msk.bf16.mxu0 %vm2983_vm1, %v2672_v38  ;;  %v2734_v37 = vpack.c.bf16 %v1513_v34, %v1512_v33 }
  0x17   :  { %2690 = vmatprep.subr.bf16.mxu1 %v2925_v3  ;;  %v2727_v26 = vpack.c.bf16 %v586_v19, %v585_v18  ;;  %v1509_v19 = vld [vmem:[%s4877_s1 + $0x28] sm:$0xff] }
  0x18   :  { %v1678_v24 = vmul.f32 %v1509_v19, %v1509_v19 }
  0x1d   :  { %2677 = vmatpush3.bf16.xpose.msk.msra.mxu0 %vm2983_vm1, %v2672_v38  ;;  %v733_v38 = vld [vmem:[%s4875_s6 + $0x30] sm:$0xff] }
  0x1e   :  { %2693 = vmatpush3.bf16.xpose.msk.msra.mxu1 %vm2983_vm1, %v2691_v53  ;;  %2696 = vmatprep.subr.msk.bf16.mxu0 %vm2983_vm1, %v2694_v54  ;;  %v1505_v53 = vld [vmem:[%s4877_s1 + $0x8] sm:$0xff] }
  0x1f   :  { %2718 = vmatprep.subr.bf16.mxu1 %v2925_v3 }
  0x24   :  { %2530 = vmatmul.mubr.msk.f32.vlgmr.msra.gmra.mrb[0].mxu0 %vm45_vm0, %v3124_v60  ;;  %740 = vperm.xlu1 %2780, %v728_v11  }
  0x25   :  { %2558 = vmatmul.mubr.msk.f32.vlgmr.msra.gmra.mrb[0].mxu1 %vm45_vm0, %v2929_v0  ;;  %2699 = vmatpush3.bf16.xpose.msk.msra.mxu0 %vm2983_vm1, %v2694_v54  ;;  %v1674_v54 = vmul.f32 %v1505_v53, %v1505_v53 }
  0x26   :  { %2721 = vmatpush3.bf16.xpose.msk.msra.mxu1 %vm2983_vm1, %v2719_v61  ;;  %2702 = vmatprep.subr.msk.bf16.mxu0 %vm2983_vm1, %v2700_v62 }
  0x27   :  { %2722 = vmatprep.subr.bf16.mxu1 %v2925_v3  ;;  %2532 = vmatprep.mubr.msk.f32.mxu0 %vm45_vm0, %v3131_v63  ;;  %v1684_v58 = vsel %vm45_vm0, %v1674_v54, 0.0 }
  0x28   :  { %2533 = vmatmul.mubr.msk.f32.gmra.mrb[2].mxu0 %vm45_vm0, %v3140_v1  ;;  %2604 = vmatprep.mubr.msk.f32.mxu1 %vm2926_vm2, %v2927_v4 }
  0x29   :  { %2535 = vmatprep.mubr.msk.f32.mxu0 %vm45_vm0, %v3149_v7  ;;  %743 = vperm.xlu1 %2780, %v729_v17   ;;  %v1507_v17 = vld [vmem:[%s4877_s1 + $0x18] sm:$0xff] }
  0x2a   :  { %737 = vperm.xlu0 %2779, %v727_v28   ;;  %v1676_v2 = vmul.f32 %v1507_v17, %v1507_v17 }
  0x2c   :  { %2536 = vmatmul.mubr.msk.f32.gmra.mrb[4].mxu0 %vm45_vm0, %v3169_v10 }
  0x2d   :  { %2705 = vmatpush3.bf16.xpose.msk.msra.mxu0 %vm2983_vm1, %v2700_v62  ;;  %2538 = vmatprep.mubr.msk.f32.mxu0 %vm45_vm0, %v3177_v15  ;;  %v1508_v62 = vld [vmem:[%s4877_s1 + $0x20] sm:$0xff] }
  0x2e   :  { %2725 = vmatpush3.bf16.xpose.msk.msra.mxu1 %vm2983_vm1, %v2723_v12  ;;  %2708 = vmatprep.subr.msk.bf16.mxu0 %vm2983_vm1, %v2706_v14  ;;  %v1677_v6 = vmul.f32 %v1508_v62, %v1508_v62  ;;  %v1679_v12 = vmul.f32 %v1510_v9, %v1510_v9 }
  0x2f   :  { %2726 = vmatprep.subr.bf16.mxu1 %v2925_v3  ;;  %746 = vperm.xlu1 %2780, %v730_v25   ;;  %v1696_v25 = vsel %vm45_vm0, %v1678_v24, 0.0 }
  0x30   :  { %2539 = vmatmul.mubr.msk.f32.gmra.mrb[6].mxu0 %vm45_vm0, %v3188_v16  ;;  %v1693_v11 = vsel %vm45_vm0, %v1677_v6, 0.0  ;;  %v3384_v6 = vld [vmem:[%s4878_s7] ss:$0 sm:$0xff] }
  0x31   :  { %2576 = vmatprep.mubr.msk.f32.mxu0 %vm45_vm0, %v3031_v22  ;;  %v587_v22 = vmul.f32 %v394_v23, %v394_v23  ;;  %v1690_v23 = vsel %vm45_vm0, %v1676_v2, 0.0 }
  0x33   :  { %749 = vperm.xlu1 %2780, %v731_v29   ;;  %v2731_v36 = vpack.c.bf16 %v588_v30, %v587_v22  ;;  %v336_v29 = vlaneseq }
  0x35   :  { %2711 = vmatpush3.bf16.xpose.msk.msra.mxu0 %vm2983_vm1, %v2706_v14  ;;  %v337_v22 = vshrl.u32 %v336_v29, 7 }
  0x36   :  { %2729 = vmatpush3.bf16.xpose.msk.msra.mxu1 %vm2983_vm1, %v2727_v26  ;;  %2714 = vmatprep.subr.msk.bf16.mxu0 %vm2983_vm1, %v2712_v27 }
  0x37   :  { %2730 = vmatprep.subr.bf16.mxu1 %v2925_v3  ;;  %752 = vperm.xlu1 %2780, %v732_v35   ;;  %v3349_v33 = vsub.s32 0, %v337_v22 }
  0x3b   :  { %755 = vperm.xlu1 %2780, %v733_v38  }
  0x3d   :  { %2717 = vmatpush3.bf16.xpose.msk.msra.mxu0 %vm2983_vm1, %v2712_v27 }
  0x3e   :  { %2733 = vmatpush3.bf16.xpose.msk.msra.mxu1 %vm2983_vm1, %v2731_v36  ;;  %2736 = vmatprep.subr.msk.bf16.mxu0 %vm2983_vm1, %v2734_v37 }
  0x3f   :  { %2758 = vmatprep.subr.bf16.mxu1 %v2925_v3  ;;  %758 = vperm.xlu1 %2780, %v734_v45  }
  0x44   :  { %2577 = vmatmul.mubr.msk.f32.vlgmr.msra.gmra.mrb[8].mxu0 %vm45_vm0, %v3061_v32  ;;  %v1516_v32 = vld [vmem:[%s4876_s4 + $0x20] sm:$0xff] }
  0x45   :  { %2605 = vmatmul.mubr.msk.f32.vlgmr.msra.gmra.mrb[2].mxu1 %vm45_vm0, %v2929_v0  ;;  %2739 = vmatpush3.bf16.xpose.msk.msra.mxu0 %vm2983_vm1, %v2734_v37  ;;  %v2746_v52 = vpack.c.bf16 %v1517_v51, %v1516_v32 }
  0x46   :  { %2761 = vmatpush3.bf16.xpose.msk.msra.mxu1 %vm2983_vm1, %v2759_v46  ;;  %2579 = vmatprep.mubr.msk.f32.mxu0 %vm45_vm0, %v3021_v20  ;;  %v2763_v20 = vpack.c.bf16 %v1708_v50, %v1707_v48 }
  0x47   :  { %2742 = vmatprep.subr.msk.bf16.mxu0 %vm2983_vm1, %v2740_v47  ;;  %2762 = vmatprep.subr.bf16.mxu1 %v2925_v3 }
  0x48   :  { %2580 = vmatmul.mubr.msk.f32.gmra.mrb[10].mxu0 %vm45_vm0, %v3026_v21  ;;  %2651 = vmatprep.mubr.msk.f32.mxu1 %vm2926_vm2, %v2927_v4  ;;  %v1709_v4 = vmul.f32 %v1516_v32, %v1516_v32  ;;  %v1710_v21 = vmul.f32 %v1517_v51, %v1517_v51 }
  0x49   :  { %2582 = vmatprep.mubr.msk.f32.mxu0 %vm45_vm0, %v3077_v40  ;;  %v1504_v40 = vld [vmem:[%s4877_s1] sm:$0xff]  ;;  %1685 = vadd.xlane.f32.xlu0 %v1684_v58 }
  0x4a   :  { %v2767_v55 = vpack.c.bf16 %v1710_v21, %v1709_v4  ;;  %v1673_v14 = vmul.f32 %v1504_v40, %v1504_v40 }
  0x4c   :  { %2583 = vmatmul.mubr.msk.f32.gmra.mrb[12].mxu0 %vm45_vm0, %v3056_v31  ;;  %v1518_v31 = vld [vmem:[%s4876_s4 + $0x30] sm:$0xff]  ;;  %v1681_v18 = vsel %vm45_vm0, %v1673_v14, 0.0 }
  0x4d   :  { %2745 = vmatpush3.bf16.xpose.msk.msra.mxu0 %vm2983_vm1, %v2740_v47  ;;  %2585 = vmatprep.mubr.msk.f32.mxu0 %vm45_vm0, %v3101_v49  ;;  %v1519_v49 = vld [vmem:[%s4876_s4 + $0x38] sm:$0xff] }
  0x4e   :  { %2765 = vmatpush3.bf16.xpose.msk.msra.mxu1 %vm2983_vm1, %v2763_v20  ;;  %2748 = vmatprep.subr.msk.bf16.mxu0 %vm2983_vm1, %v2746_v52  ;;  %v2752_v56 = vpack.c.bf16 %v1519_v49, %v1518_v31  ;;  %v1712_v61 = vmul.f32 %v1519_v49, %v1519_v49 }
  0x4f   :  { %2766 = vmatprep.subr.bf16.mxu1 %v2925_v3  ;;  %1688 = vadd.xlane.f32.xlu0 %v1687_v5 }
  0x50   :  { %2586 = vmatmul.mubr.msk.f32.gmra.mrb[14].mxu0 %vm45_vm0, %v3072_v39  ;;  %v1711_v39 = vmul.f32 %v1518_v31, %v1518_v31 }
  0x51   :  { %2623 = vmatprep.mubr.msk.f32.mxu0 %vm45_vm0, %v1504_v40 }
  0x52   :  { %v2771_v8 = vpack.c.bf16 %v1712_v61, %v1711_v39 }
  0x53   :  { %1694 = vadd.xlane.f32.xlu0 %v1693_v11 }
  0x55   :  { %2751 = vmatpush3.bf16.xpose.msk.msra.mxu0 %vm2983_vm1, %v2746_v52 }
  0x56   :  { %2769 = vmatpush3.bf16.xpose.msk.msra.mxu1 %vm2983_vm1, %v2767_v55  ;;  %2754 = vmatprep.subr.msk.bf16.mxu0 %vm2983_vm1, %v2752_v56 }
  0x57   :  { %2770 = vmatprep.subr.bf16.mxu1 %v2925_v3  ;;  %v1699_v3 = vsel %vm45_vm0, %v1679_v12, 0.0 }
  0x58   :  { %1700 = vadd.xlane.f32.xlu0 %v1699_v3 }
  0x5d   :  { %2757 = vmatpush3.bf16.xpose.msk.msra.mxu0 %vm2983_vm1, %v2752_v56  ;;  %v773_v56 = vand.u32 127, %v336_v29 }
  0x5e   :  { %2773 = vmatpush3.bf16.xpose.msk.msra.mxu1 %vm2983_vm1, %v2771_v8 }
  0x5f   :  { %v3388_v14 = vadd.s32 8388608, %v773_v56 }
  0x63   :  { %1682 = vadd.xlane.f32.xlu1 %v1681_v18 }
  0x64   :  { %2624 = vmatmul.mubr.msk.f32.vlgmr.msra.gmra.mrb[16].mxu0 %vm45_vm0, %v1505_v53 }
  0x65   :  { %2652 = vmatmul.mubr.msk.f32.vlgmr.msra.gmra.mrb[4].mxu1 %vm45_vm0, %v2929_v0  ;;  %2626 = vmatprep.mubr.msk.f32.mxu0 %vm45_vm0, %v1506_v57  ;;  %v1511_v0 = vld [vmem:[%s4877_s1 + $0x38] sm:$0xff] }
  0x66   :  { %v1680_v26 = vmul.f32 %v1511_v0, %v1511_v0 }
  0x67   :  { %1691 = vadd.xlane.f32.xlu1 %v1690_v23 }
  0x68   :  { %2627 = vmatmul.mubr.msk.f32.gmra.mrb[18].mxu0 %vm45_vm0, %v1507_v17  ;;  %v1702_v27 = vsel %vm45_vm0, %v1680_v26, 0.0 }
  0x69   :  { %2629 = vmatprep.mubr.msk.f32.mxu0 %vm45_vm0, %v1508_v62 }
  0x6b   :  { %1697 = vadd.xlane.f32.xlu1 %v1696_v25 }
  0x6c   :  { %2630 = vmatmul.mubr.msk.f32.gmra.mrb[20].mxu0 %vm45_vm0, %v1509_v19 }
  0x6d   :  { %2632 = vmatprep.mubr.msk.f32.mxu0 %vm45_vm0, %v1510_v9 }
  0x6f   :  { %1703 = vadd.xlane.f32.xlu1 %v1702_v27 }
  0x70   :  { %2633 = vmatmul.mubr.msk.f32.gmra.mrb[22].mxu0 %vm45_vm0, %v1511_v0 }
  0x94   :  { %v565_v28 = vpop.xlane.xlu1 %564 }
  0x95   :  { %v559_v32 = vpop.xlane.xlu0 %558 }
  0x98   :  { %v568_v30 = vpop.xlane.xlu1 %567 }
  0x99   :  { %v562_v20 = vpop.xlane.xlu0 %561 }
  0x9c   :  { %v574_v41 = vpop.xlane.xlu1 %573 }
  0x9d   :  { %v571_v4 = vpop.xlane.xlu0 %570 }
  0xa0   :  { %v3362_v44 = vpop.xlane.xlu1 %579 }
  0xa1   :  { %v577_v59 = vpop.xlane.xlu0 %576 }
  0xa4   :  { %v3372_v50 = vpop.permute.xlu1 %740 }
  0xa5   :  { %vm765_vm6 = vcmp.eq.s32.totalorder %v3372_v50, %v3384_v6 }
  0xa8   :  { %v3374_v51 = vpop.permute.xlu1 %743 }
  0xa9   :  { %v3390_v23 = vpop.permute.xlu0 %737  ;;  %vm766_vm4 = vcmp.eq.s32.totalorder %v3374_v51, %v3384_v6 }
  0xaa   :  { %vm764_vm5 = vcmp.eq.s32.totalorder %v3390_v23, %v3384_v6 }
  0xae   :  { %v3376_v52 = vpop.permute.xlu1 %746 }
  0xaf   :  { %vm767_vm7 = vcmp.eq.s32.totalorder %v3376_v52, %v3384_v6 }
  0xb2   :  { %v3378_v21 = vpop.permute.xlu1 %749 }
  0xb3   :  { %vm768_vm8 = vcmp.eq.s32.totalorder %v3378_v21, %v3384_v6 }
  0xb6   :  { %v3386_v8 = vpop.permute.xlu1 %752 }
  0xb7   :  { %vm769_vm9 = vcmp.eq.s32.totalorder %v3386_v8, %v3384_v6 }
  0xf7   :  { %v3351_v34 = vpop.f32.mrb[0].mxu0 }
  0xf8   :  { %v332_v35 = vpop.f32.mrb[0].mxu1  ;;  %v3353_v36 = vpop.f32.mrb[1].mxu0 }
  0xf9   :  { %v3356_v37 = vrot.slane %v332_v35, %v3349_v33  ;;  %v2559_v38 = vpop.f32.mrb[1].mxu1 }
  0xfb   :  { %4933 = vst [vmem:[#allocation2_spill] sm:$0xff] %v3356_v37  ;;  %v3358_v42 = vpop.f32.mrb[2].mxu0 }
  0xfc   :  { %v3360_v43 = vpop.f32.mrb[3].mxu0 }
  0xff   :  { %v3364_v45 = vpop.f32.mrb[4].mxu0 }
 0x100   :  { %v3366_v46 = vpop.f32.mrb[5].mxu0 }
 0x103   :  { %v3368_v47 = vpop.f32.mrb[6].mxu0 }
 0x104   :  { %v3370_v48 = vpop.f32.mrb[7].mxu0 }
 0x105   :  { %4934 = vst [vmem:[#allocation3_spill] sm:$0xff] %v3370_v48 }
 0x117   :  { %v2578_v40 = vpop.f32.mrb[8].mxu0 }
 0x118   :  { %v679_v31 = vpop.f32.mrb[2].mxu1  ;;  %v510_v49 = vpop.f32.mrb[9].mxu0  ;;  %v696_v57 = vmul.f32 2.0, %v2578_v40 }
 0x119   :  { %v686_v53 = vrot.slane %v679_v31, %v3349_v33  ;;  %v2606_v54 = vpop.f32.mrb[3].mxu1  ;;  %v695_v55 = vmul.f32 2.0, %v510_v49  ;;  %v3396_v40 = vpop.permute.xlu1 %755 }
 0x11a   :  { %vm770_vm10 = vcmp.eq.s32.totalorder %v3396_v40, %v3384_v6 }
 0x11b   :  { %v687_v58 = vadd.f32 %v686_v53, %v559_v32  ;;  %v2581_v39 = vpop.f32.mrb[10].mxu0  ;;  %v690_v61 = vadd.f32 %v686_v53, %v568_v30  ;;  %v689_v11 = vadd.f32 %v686_v53, %v565_v28  ;;  %v688_v3 = vadd.f32 %v686_v53, %v562_v20 }
 0x11c   :  { %v698_v62 = vmul.f32 2.0, %v2581_v39  ;;  %v520_v5 = vpop.f32.mrb[11].mxu0  ;;  %v692_v25 = vadd.f32 %v686_v53, %v574_v41  ;;  %v691_v28 = vadd.f32 %v686_v53, %v571_v4  ;;  %v693_v38 = vadd.f32 %v686_v53, %v577_v59 }
 0x11d   :  { %v703_v9 = vsub.f32 %v687_v58, %v695_v55  ;;  %v697_v12 = vmul.f32 2.0, %v520_v5  ;;  %v704_v24 = vsub.f32 %v688_v3, %v696_v57  ;;  %v694_v4 = vadd.f32 %v686_v53, %v3362_v44 }
 0x11e   :  { %v706_v17 = vsub.f32 %v690_v61, %v698_v62 }
 0x11f   :  { %v711_v18 = vmax.f32 %v703_v9, 0.0  ;;  %v705_v2 = vsub.f32 %v689_v11, %v697_v12  ;;  %v2584_v19 = vpop.f32.mrb[12].mxu0  ;;  %v712_v35 = vmax.f32 %v704_v24, 0.0 }
 0x120   :  { %v714_v0 = vmax.f32 %v706_v17, 0.0  ;;  %v700_v26 = vmul.f32 2.0, %v2584_v19  ;;  %v530_v27 = vpop.f32.mrb[13].mxu0 }
 0x121   :  { %v719_v29 = vmin.f32 %v711_v18, 1e+30  ;;  %v713_v22 = vmax.f32 %v705_v2, 0.0  ;;  %v699_v30 = vmul.f32 2.0, %v530_v27  ;;  %v720_v41 = vmin.f32 %v712_v35, 1e+30 }
 0x122   :  { %v722_v32 = vmin.f32 %v714_v0, 1e+30  ;;  %v708_v20 = vsub.f32 %v692_v25, %v700_v26  ;;  %v3412_v25 = vpop.permute.xlu1 %758 }
 0x123   :  { %v782_v31 = vand.u32 4294967232, %v719_v29  ;;  %v721_v49 = vmin.f32 %v713_v22, 1e+30  ;;  %v707_v54 = vsub.f32 %v691_v28, %v699_v30  ;;  %v2587_v55 = vpop.f32.mrb[14].mxu0  ;;  %v783_v12 = vand.u32 4294967232, %v720_v41 }
 0x124   :  { %v785_v56 = vand.u32 4294967232, %v722_v32  ;;  %v716_v57 = vmax.f32 %v708_v20, 0.0  ;;  %v702_v58 = vmul.f32 2.0, %v2587_v55  ;;  %v540_v39 = vpop.f32.mrb[15].mxu0  ;;  %v1686_v32 = vpop.xlane.xlu0 %1685  ;;  %vm771_vm11 = vcmp.eq.s32.totalorder %v3412_v25, %v3384_v6 }
 0x125   :  { %v784_v61 = vand.u32 4294967232, %v721_v49  ;;  %v715_v59 = vmax.f32 %v707_v54, 0.0  ;;  %v701_v62 = vmul.f32 2.0, %v540_v39  ;;  %v791_v5 = vadd.s32 %v3388_v14, %v782_v31 }
 0x126   :  { %v724_v9 = vmin.f32 %v716_v57, 1e+30  ;;  %v710_v11 = vsub.f32 %v694_v4, %v702_v58  ;;  %v794_v3 = vadd.s32 %v3388_v14, %v785_v56  ;;  %v792_v24 = vadd.s32 %v3388_v14, %v783_v12  ;;  %v1683_v56 = vpop.xlane.xlu1 %1682 }
 0x127   :  { %v723_v17 = vmin.f32 %v715_v59, 1e+30  ;;  %v709_v18 = vsub.f32 %v693_v38, %v701_v62  ;;  %v3404_v2 = vsel %vm764_vm5, %v791_v5, 3.4028235e+38  ;;  %v793_v44 = vadd.s32 %v3388_v14, %v784_v61 }
 0x128   :  { %v787_v53 = vand.u32 4294967232, %v724_v9  ;;  %v718_v19 = vmax.f32 %v710_v11, 0.0  ;;  %v816_v0 = vsel %vm815_vm3, %v3404_v2, inf  ;;  %v3424_v22 = vsel %vm765_vm6, %v792_v24, 3.4028235e+38  ;;  %v1689_v62 = vpop.xlane.xlu0 %1688 }
 0x129   :  { %v786_v26 = vand.u32 4294967232, %v723_v17  ;;  %v717_v27 = vmax.f32 %v709_v18, 0.0  ;;  %817 = vmin.xlane.f32.xlu0 %v816_v0  ;;  %v3417_v28 = vsel %vm766_vm4, %v793_v44, 3.4028235e+38  ;;  %v819_v35 = vsel %vm815_vm3, %v3424_v22, inf }
 0x12a   :  { %v726_v29 = vmin.f32 %v718_v19, 1e+30  ;;  %820 = vmin.xlane.f32.xlu1 %v819_v35  ;;  %v3434_v31 = vsel %vm767_vm7, %v794_v3, 3.4028235e+38  ;;  %v822_v49 = vsel %vm815_vm3, %v3417_v28, inf  ;;  %v796_v54 = vadd.s32 %v3388_v14, %v787_v53  ;;  %v1692_v9 = vpop.xlane.xlu1 %1691 }
 0x12b   :  { %v725_v30 = vmin.f32 %v717_v27, 1e+30  ;;  %v795_v38 = vadd.s32 %v3388_v14, %v786_v26  ;;  %v825_v57 = vsel %vm815_vm3, %v3434_v31, inf }
 0x12c   :  { %v789_v20 = vand.u32 4294967232, %v726_v29  ;;  %v3454_v58 = vsel %vm769_vm9, %v796_v54, 3.4028235e+38  ;;  %v1695_v18 = vpop.xlane.xlu0 %1694 }
 0x12d   :  { %v788_v55 = vand.u32 4294967232, %v725_v30  ;;  %823 = vmin.xlane.f32.xlu0 %v822_v49  ;;  %v3442_v41 = vsel %vm768_vm8, %v795_v38, 3.4028235e+38  ;;  %v831_v5 = vsel %vm815_vm3, %v3454_v58, inf }
 0x12e   :  { %826 = vmin.xlane.f32.xlu1 %v825_v57  ;;  %v828_v39 = vsel %vm815_vm3, %v3442_v41, inf  ;;  %v798_v61 = vadd.s32 %v3388_v14, %v789_v20  ;;  %v1698_v26 = vpop.xlane.xlu1 %1697 }
 0x12f   :  { %v797_v4 = vadd.s32 %v3388_v14, %v788_v55 }
 0x130   :  { %v3471_v11 = vsel %vm771_vm11, %v798_v61, 3.4028235e+38 }
 0x131   :  { %829 = vmin.xlane.f32.xlu0 %v828_v39  ;;  %v3462_v59 = vsel %vm770_vm10, %v797_v4, 3.4028235e+38  ;;  %v837_v3 = vsel %vm815_vm3, %v3471_v11, inf }
 0x132   :  { %832 = vmin.xlane.f32.xlu1 %v831_v5  ;;  %v834_v12 = vsel %vm815_vm3, %v3462_v59, inf  ;;  %v1701_v5 = vpop.xlane.xlu0 %1700 }
 0x135   :  { %835 = vmin.xlane.f32.xlu0 %v834_v12 }
 0x136   :  { %838 = vmin.xlane.f32.xlu1 %v837_v3 }
 0x137   :  { %v2625_v17 = vpop.f32.mrb[16].mxu0 }
 0x138   :  { %v1803_v44 = vpop.f32.mrb[4].mxu1  ;;  %v1634_v53 = vpop.f32.mrb[17].mxu0  ;;  %v1820_v24 = vmul.f32 2.0, %v2625_v17 }
 0x139   :  { %v1810_v19 = vrot.slane %v1803_v44, %v3349_v33  ;;  %v1819_v0 = vmul.f32 2.0, %v1634_v53  ;;  %v2653_v27 = vpop.f32.mrb[5].mxu1  ;;  %v1704_v53 = vpop.xlane.xlu1 %1703 }
 0x13b   :  { %v1812_v29 = vadd.f32 %v1810_v19, %v1686_v32  ;;  %v1811_v30 = vadd.f32 %v1810_v19, %v1683_v56  ;;  %v1814_v35 = vadd.f32 %v1810_v19, %v1692_v9  ;;  %v2628_v38 = vpop.f32.mrb[18].mxu0  ;;  %v1813_v20 = vadd.f32 %v1810_v19, %v1689_v62 }
 0x13c   :  { %v1822_v49 = vmul.f32 2.0, %v2628_v38  ;;  %v1644_v54 = vpop.f32.mrb[19].mxu0  ;;  %v1816_v61 = vadd.f32 %v1810_v19, %v1698_v26  ;;  %v1815_v44 = vadd.f32 %v1810_v19, %v1695_v18 }
 0x13d   :  { %v1828_v55 = vsub.f32 %v1812_v29, %v1820_v24  ;;  %v1827_v57 = vsub.f32 %v1811_v30, %v1819_v0  ;;  %v1821_v4 = vmul.f32 2.0, %v1644_v54  ;;  %v1818_v0 = vadd.f32 %v1810_v19, %v1704_v53 }
 0x13e   :  { %v1830_v39 = vsub.f32 %v1814_v35, %v1822_v49  ;;  %v1817_v29 = vadd.f32 %v1810_v19, %v1701_v5 }
 0x13f   :  { %v1836_v12 = vmax.f32 %v1828_v55, 0.0  ;;  %v1835_v3 = vmax.f32 %v1827_v57, 0.0  ;;  %v1829_v33 = vsub.f32 %v1813_v20, %v1821_v4  ;;  %v2631_v17 = vpop.f32.mrb[20].mxu0 }
 0x140   :  { %v1838_v27 = vmax.f32 %v1830_v39, 0.0  ;;  %v1824_v32 = vmul.f32 2.0, %v2631_v17  ;;  %v1654_v56 = vpop.f32.mrb[21].mxu0 }
 0x141   :  { %v1844_v9 = vmin.f32 %v1836_v12, 1e+30  ;;  %v1843_v37 = vmin.f32 %v1835_v3, 1e+30  ;;  %v1837_v62 = vmax.f32 %v1829_v33, 0.0  ;;  %v1823_v38 = vmul.f32 2.0, %v1654_v56 }
 0x142   :  { %v1846_v48 = vmin.f32 %v1838_v27, 1e+30  ;;  %v1832_v24 = vsub.f32 %v1816_v61, %v1824_v32 }
 0x143   :  { %v1860_v30 = vand.u32 4294967232, %v1844_v9  ;;  %v1859_v26 = vand.u32 4294967232, %v1843_v37  ;;  %v1845_v35 = vmin.f32 %v1837_v62, 1e+30  ;;  %v1831_v49 = vsub.f32 %v1815_v44, %v1823_v38  ;;  %v2634_v54 = vpop.f32.mrb[22].mxu0 }
 0x144   :  { %v1862_v20 = vand.u32 4294967232, %v1846_v48  ;;  %v1840_v55 = vmax.f32 %v1832_v24, 0.0  ;;  %v1826_v18 = vmul.f32 2.0, %v2634_v54  ;;  %v1664_v57 = vpop.f32.mrb[23].mxu0 }
 0x145   :  { %v1861_v4 = vand.u32 4294967232, %v1845_v35  ;;  %v1839_v39 = vmax.f32 %v1831_v49, 0.0  ;;  %v1825_v17 = vmul.f32 2.0, %v1664_v57  ;;  %v1868_v12 = vadd.s32 %v1860_v30, %v3388_v14 }
 0x146   :  { %v1848_v3 = vmin.f32 %v1840_v55, 1e+30  ;;  %v1834_v33 = vsub.f32 %v1818_v0, %v1826_v18  ;;  %v1867_v61 = vadd.s32 %v1859_v26, %v3388_v14  ;;  %v1870_v19 = vadd.s32 %v1862_v20, %v3388_v14 }
 0x147   :  { %v1847_v5 = vmin.f32 %v1839_v39, 1e+30  ;;  %v1833_v37 = vsub.f32 %v1817_v29, %v1825_v17  ;;  %v3484_v48 = vsel %vm765_vm6, %v1868_v12, 3.4028235e+38  ;;  %v1869_v44 = vadd.s32 %v1861_v4, %v3388_v14 }
 0x148   :  { %v1864_v53 = vand.u32 4294967232, %v1848_v3  ;;  %v1842_v27 = vmax.f32 %v1834_v33, 0.0  ;;  %v1894_v32 = vsel %vm815_vm3, %v3484_v48, inf  ;;  %v3492_v56 = vsel %vm764_vm5, %v1867_v61, 3.4028235e+38 }
 0x149   :  { %v1863_v9 = vand.u32 4294967232, %v1847_v5  ;;  %v1841_v62 = vmax.f32 %v1833_v37, 0.0  ;;  %1895 = vmin.xlane.f32.xlu1 %v1894_v32  ;;  %v1891_v50 = vsel %vm815_vm3, %v3492_v56, inf  ;;  %v3499_v38 = vsel %vm767_vm7, %v1870_v19, 3.4028235e+38 }
 0x14a   :  { %v1850_v24 = vmin.f32 %v1842_v27, 1e+30  ;;  %1892 = vmin.xlane.f32.xlu0 %v1891_v50  ;;  %v3504_v0 = vsel %vm766_vm4, %v1869_v44, 3.4028235e+38  ;;  %v1872_v23 = vadd.s32 %v1864_v53, %v3388_v14  ;;  %v1900_v35 = vsel %vm815_vm3, %v3499_v38, inf }
 0x14b   :  { %v1849_v29 = vmin.f32 %v1841_v62, 1e+30  ;;  %v1871_v30 = vadd.s32 %v1863_v9, %v3388_v14  ;;  %v1897_v52 = vsel %vm815_vm3, %v3504_v0, inf }
 0x14c   :  { %v1866_v26 = vand.u32 4294967232, %v1850_v24  ;;  %v3515_v51 = vsel %vm769_vm9, %v1872_v23, 3.4028235e+38 }
 0x14d   :  { %v1865_v49 = vand.u32 4294967232, %v1849_v29  ;;  %1901 = vmin.xlane.f32.xlu1 %v1900_v35  ;;  %v3520_v54 = vsel %vm768_vm8, %v1871_v30, 3.4028235e+38  ;;  %v1906_v18 = vsel %vm815_vm3, %v3515_v51, inf  ;;  %v199_v30 = vmul.f32 %v3001_v13, %v3001_v13 }
 0x14e   :  { %1898 = vmin.xlane.f32.xlu0 %v1897_v52  ;;  %v1874_v20 = vadd.s32 %v1866_v26, %v3388_v14  ;;  %v1903_v57 = vsel %vm815_vm3, %v3520_v54, inf  ;;  %v200_v35 = vmul.f32 %v3124_v60, %v3124_v60  ;;  %v201_v13 = vmul.f32 %v3131_v63, %v3131_v63 }
 0x14f   :  { %v1873_v55 = vadd.s32 %v1865_v49, %v3388_v14 }
 0x150   :  { %v3531_v8 = vsel %vm771_vm11, %v1874_v20, 3.4028235e+38  ;;  %v210_v52 = vsel %vm45_vm0, %v200_v35, 0.0  ;;  %v207_v20 = vsel %vm45_vm0, %v199_v30, 0.0  ;;  %v213_v60 = vsel %vm45_vm0, %v201_v13, 0.0 }
 0x151   :  { %1907 = vmin.xlane.f32.xlu1 %v1906_v18  ;;  %v3536_v21 = vsel %vm770_vm10, %v1873_v55, 3.4028235e+38  ;;  %v1912_v14 = vsel %vm815_vm3, %v3531_v8, inf  ;;  %v202_v55 = vmul.f32 %v3140_v1, %v3140_v1 }
 0x152   :  { %1904 = vmin.xlane.f32.xlu0 %v1903_v57  ;;  %v1909_v4 = vsel %vm815_vm3, %v3536_v21, inf  ;;  %v204_v57 = vmul.f32 %v3169_v10, %v3169_v10 }
 0x153   :  { %v216_v18 = vsel %vm45_vm0, %v202_v55, 0.0 }
 0x154   :  { %v222_v1 = vsel %vm45_vm0, %v204_v57, 0.0 }
 0x155   :  { %1913 = vmin.xlane.f32.xlu1 %v1912_v14  ;;  %v203_v14 = vmul.f32 %v3149_v7, %v3149_v7 }
 0x156   :  { %1910 = vmin.xlane.f32.xlu0 %v1909_v4 }
 0x157   :  { %v219_v63 = vsel %vm45_vm0, %v203_v14, 0.0 }
 0x1b6   :  { %v3542_v39 = vpop.xlane.xlu0 %817 }
 0x1b7   :  { %vm936_vm12 = vcmp.eq.f32.partialorder %v3404_v2, %v3542_v39  ;;  %v3552_v40 = vpop.xlane.xlu1 %820  ;;  %v2365_v14 = vadd.s32 4286578688, %v3542_v39 }
 0x1b8   :  { %v3550_v6 = vsel %vm936_vm12, 3.4028235e+38, %v3404_v2  ;;  %vm937_vm13 = vcmp.eq.f32.partialorder %v3424_v22, %v3552_v40 }
 0x1b9   :  { %4935 = vst [vmem:[#allocation4_spill] sm:$0xff] %v3550_v6  ;;  %v1048_v25 = vsel %vm815_vm3, %v3550_v6, inf  ;;  %v3566_v12 = vsel %vm937_vm13, 3.4028235e+38, %v3424_v22 }
 0x1ba   :  { %v3558_v17 = vpop.xlane.xlu0 %823  ;;  %1049 = vmin.xlane.f32.xlu0 %v1048_v25  ;;  %4936 = vst [vmem:[#allocation5_spill] sm:$0xff] %v3566_v12  ;;  %v1051_v33 = vsel %vm815_vm3, %v3566_v12, inf  ;;  %v206_v25 = vmul.f32 %v3188_v16, %v3188_v16 }
 0x1bb   :  { %vm938_vm14 = vcmp.eq.f32.partialorder %v3417_v28, %v3558_v17  ;;  %v3568_v3 = vpop.xlane.xlu1 %826  ;;  %1052 = vmin.xlane.f32.xlu1 %v1051_v33  ;;  %v205_v33 = vmul.f32 %v3177_v15, %v3177_v15 }
 0x1bc   :  { %v3576_v61 = vsel %vm938_vm14, 3.4028235e+38, %v3417_v28  ;;  %vm939_vm15 = vcmp.eq.f32.partialorder %v3434_v31, %v3568_v3  ;;  %v228_v10 = vsel %vm45_vm0, %v206_v25, 0.0 }
 0x1bd   :  { %4937 = vst [vmem:[#allocation6_spill] sm:$0xff] %v3576_v61  ;;  %v1054_v5 = vsel %vm815_vm3, %v3576_v61, inf  ;;  %v3594_v44 = vsel %vm939_vm15, 3.4028235e+38, %v3434_v31 }
 0x1be   :  { %v3580_v19 = vpop.xlane.xlu0 %829  ;;  %1055 = vmin.xlane.f32.xlu0 %v1054_v5  ;;  %4938 = vst [vmem:[#allocation7_spill] sm:$0xff] %v3594_v44  ;;  %v1057_v53 = vsel %vm815_vm3, %v3594_v44, inf }
 0x1bf   :  { %v3584_v37 = vpop.xlane.xlu1 %832  ;;  %vm4902_vm2 = vcmp.eq.f32.partialorder %v3442_v41, %v3580_v19  ;;  %1058 = vmin.xlane.f32.xlu1 %v1057_v53  ;;  %v225_v53 = vsel %vm45_vm0, %v205_v33, 0.0 }
 0x1c0   :  { %vm941_vm1 = vcmp.eq.f32.partialorder %v3454_v58, %v3584_v37  ;;  %v3610_v9 = vsel %vm4902_vm2, 3.4028235e+38, %v3442_v41 }
 0x1c1   :  { %v3604_v32 = vsel %vm941_vm1, 3.4028235e+38, %v3454_v58  ;;  %4940 = vst [vmem:[#allocation9_spill] sm:$0xff] %v3610_v9  ;;  %v1060_v24 = vsel %vm815_vm3, %v3610_v9, inf }
 0x1c2   :  { %4939 = vst [vmem:[#allocation8_spill] sm:$0xff] %v3604_v32  ;;  %v3612_v62 = vpop.xlane.xlu0 %835  ;;  %v1063_v50 = vsel %vm815_vm3, %v3604_v32, inf  ;;  %1061 = vmin.xlane.f32.xlu0 %v1060_v24 }
 0x1c3   :  { %v3598_v27 = vpop.xlane.xlu1 %838  ;;  %vm4889_vm5 = vcmp.eq.f32.partialorder %v3462_v59, %v3612_v62  ;;  %1064 = vmin.xlane.f32.xlu1 %v1063_v50 }
 0x1c4   :  { %vm4896_vm4 = vcmp.eq.f32.partialorder %v3471_v11, %v3598_v27  ;;  %v3632_v29 = vsel %vm4889_vm5, 3.4028235e+38, %v3462_v59 }
 0x1c5   :  { %v3626_v23 = vsel %vm4896_vm4, 3.4028235e+38, %v3471_v11  ;;  %4942 = vst [vmem:[#allocation11_spill] sm:$0xff] %v3632_v29  ;;  %v1066_v49 = vsel %vm815_vm3, %v3632_v29, inf }
 0x1c6   :  { %4941 = vst [vmem:[#allocation10_spill] sm:$0xff] %v3626_v23  ;;  %v1069_v26 = vsel %vm815_vm3, %v3626_v23, inf  ;;  %1067 = vmin.xlane.f32.xlu0 %v1066_v49 }
 0x1c7   :  { %1070 = vmin.xlane.f32.xlu1 %v1069_v26 }
 0x1ca   :  { %208 = vadd.xlane.f32.xlu0 %v207_v20 }
 0x1cb   :  { %211 = vadd.xlane.f32.xlu1 %v210_v52 }
 0x1ce   :  { %214 = vadd.xlane.f32.xlu0 %v213_v60 }
 0x1cf   :  { %217 = vadd.xlane.f32.xlu1 %v216_v18 }
 0x1d2   :  { %220 = vadd.xlane.f32.xlu0 %v219_v63  ;;  %v856_v63 = vand.u32 4294967232, %v2365_v14 }
 0x1d3   :  { %223 = vadd.xlane.f32.xlu1 %v222_v1  ;;  %v2366_v1 = vadd.s32 4286578688, %v3552_v40 }
 0x1d4   :  { %2781 = vrsqrt.f32 %v856_v63 }
 0x1d5   :  { %v3737_v25 = vand.u32 4294967232, %v2366_v1 }
 0x1d6   :  { %v3654_v4 = vpop.xlane.xlu1 %1895  ;;  %226 = vadd.xlane.f32.xlu0 %v225_v53  ;;  %v2370_v53 = vadd.s32 4286578688, %v3584_v37 }
 0x1d7   :  { %v3662_v5 = vpop.xlane.xlu0 %1892  ;;  %vm2012_vm6 = vcmp.eq.f32.partialorder %v3484_v48, %v3654_v4  ;;  %229 = vadd.xlane.f32.xlu1 %v228_v10  ;;  %v2368_v10 = vadd.s32 4286578688, %v3568_v3  ;;  %2783 = vrsqrt.f32 %v3737_v25 }
 0x1d8   :  { %vm2011_vm7 = vcmp.eq.f32.partialorder %v3492_v56, %v3662_v5  ;;  %v3675_v15 = vsel %vm2012_vm6, 3.4028235e+38, %v3484_v48 }
 0x1d9   :  { %4943 = vst [vmem:[#allocation12_spill] sm:$0xff] %v3675_v15  ;;  %v3678_v50 = vsel %vm2011_vm7, 3.4028235e+38, %v3492_v56  ;;  %v2030_v30 = vsel %vm815_vm3, %v3675_v15, inf  ;;  %vm874_vm7 = vcmp.eq.f32.partialorder %v856_v63, inf }
 0x1da   :  { %v3668_v7 = vpop.xlane.xlu1 %1901  ;;  %4944 = vst [vmem:[#allocation13_spill] sm:$0xff] %v3678_v50  ;;  %v2027_v48 = vsel %vm815_vm3, %v3678_v50, inf }
 0x1db   :  { %v3672_v16 = vpop.xlane.xlu0 %1898  ;;  %vm2014_vm8 = vcmp.eq.f32.partialorder %v3499_v38, %v3668_v7  ;;  %2031 = vmin.xlane.f32.xlu1 %v2030_v30  ;;  %2028 = vmin.xlane.f32.xlu0 %v2027_v48  ;;  %v3746_v30 = vand.u32 4294967232, %v2368_v10  ;;  %v2372_v48 = vadd.s32 4286578688, %v3598_v27  ;;  %v3766_v10 = vmul.f32 2.0, %v3353_v36 }
 0x1dc   :  { %vm2013_vm9 = vcmp.eq.f32.partialorder %v3504_v0, %v3672_v16  ;;  %v3693_v56 = vsel %vm2014_vm8, 3.4028235e+38, %v3499_v38  ;;  %v3783_v36 = vmul.f32 2.0, %v3368_v47  ;;  %vm881_vm8 = vcmp.eq.f32.partialorder %v3737_v25, inf }
 0x1dd   :  { %4945 = vst [vmem:[#allocation14_spill] sm:$0xff] %v3693_v56  ;;  %v3696_v35 = vsel %vm2013_vm9, 3.4028235e+38, %v3504_v0  ;;  %v2036_v52 = vsel %vm815_vm3, %v3693_v56, inf  ;;  %vm883_vm9 = vcmp.eq.f32.partialorder %v3737_v25, 0.0 }
 0x1de   :  { %v3684_v24 = vpop.xlane.xlu1 %1907  ;;  %4946 = vst [vmem:[#allocation15_spill] sm:$0xff] %v3696_v35  ;;  %v2033_v38 = vsel %vm815_vm3, %v3696_v35, inf }
 0x1df   :  { %v3690_v26 = vpop.xlane.xlu0 %1904  ;;  %vm2016_vm0 = vcmp.eq.f32.partialorder %v3515_v51, %v3684_v24  ;;  %2037 = vmin.xlane.f32.xlu1 %v2036_v52  ;;  %2034 = vmin.xlane.f32.xlu0 %v2033_v38  ;;  %v2371_v38 = vadd.s32 4286578688, %v3612_v62 }
 0x1e0   :  { %vm2015_vm10 = vcmp.eq.f32.partialorder %v3520_v54, %v3690_v26  ;;  %v3709_v20 = vsel %vm2016_vm0, 3.4028235e+38, %v3515_v51  ;;  %vm876_vm0 = vcmp.eq.f32.partialorder %v856_v63, 0.0 }
 0x1e1   :  { %4948 = vst [vmem:[#allocation17_spill] sm:$0xff] %v3709_v20  ;;  %v3712_v0 = vsel %vm2015_vm10, 3.4028235e+38, %v3520_v54  ;;  %v2042_v13 = vsel %vm815_vm3, %v3709_v20, inf }
 0x1e2   :  { %v3702_v49 = vpop.xlane.xlu1 %1913  ;;  %4949 = vst [vmem:[#allocation18_spill] sm:$0xff] %v3712_v0  ;;  %v2039_v18 = vsel %vm815_vm3, %v3712_v0, inf }
 0x1e3   :  { %4947 = vst [vmem:[#allocation16_spill] sm:$0xff] %v3702_v49  ;;  %vm2018_vm11 = vcmp.eq.f32.partialorder %v3531_v8, %v3702_v49  ;;  %v3716_v55 = vpop.xlane.xlu0 %1910  ;;  %2043 = vmin.xlane.f32.xlu1 %v2042_v13  ;;  %2040 = vmin.xlane.f32.xlu0 %v2039_v18  ;;  %v3752_v13 = vand.u32 4294967232, %v2370_v53  ;;  %v3755_v18 = vand.u32 4294967232, %v2372_v48  ;;  %v3773_v48 = vmul.f32 2.0, %v3360_v43  ;;  %v4953_v49 = vld [vmem:[#allocation3_spill] sm:$0xff] }
 0x1e4   :  { %4950 = vst [vmem:[#allocation19_spill] sm:$0xff] %v3716_v55  ;;  %vm2017_vm6 = vcmp.eq.f32.partialorder %v3536_v21, %v3716_v55  ;;  %v3725_v51 = vsel %vm2018_vm11, 3.4028235e+38, %v3531_v8  ;;  %v2367_v8 = vadd.s32 4286578688, %v3558_v17  ;;  %v3779_v55 = vmul.f32 2.0, %v3366_v46 }
 0x1e5   :  { %4951 = vst [vmem:[#allocation20_spill] sm:$0xff] %v3725_v51  ;;  %v2048_v54 = vsel %vm815_vm3, %v3725_v51, inf  ;;  %v3730_v60 = vsel %vm2017_vm6, 3.4028235e+38, %v3536_v21  ;;  %v2369_v21 = vadd.s32 4286578688, %v3580_v19  ;;  %v877_v43 = vand.u32 2147483648, %v856_v63 }
 0x1e6   :  { %4952 = vst [vmem:[#allocation21_spill] sm:$0xff] %v3730_v60  ;;  %v2045_v57 = vsel %vm815_vm3, %v3730_v60, inf  ;;  %v3739_v33 = vand.u32 4294967232, %v2367_v8  ;;  %v3763_v8 = vmul.f32 2.0, %v3351_v34  ;;  %v884_v46 = vand.u32 2147483648, %v3737_v25 }
 0x1e7   :  { %2049 = vmin.xlane.f32.xlu1 %v2048_v54  ;;  %2046 = vmin.xlane.f32.xlu0 %v2045_v57  ;;  %v3749_v52 = vand.u32 4294967232, %v2369_v21  ;;  %v3758_v54 = vand.u32 4294967232, %v2371_v38  ;;  %v2782_v57 = vpop.eup %2781  ;;  %v3769_v21 = vmul.f32 2.0, %v3358_v42  ;;  %v3776_v38 = vmul.f32 2.0, %v3364_v45 }
 0x1e8   :  { %2785 = vrsqrt.f32 %v3739_v33  ;;  %v2784_v14 = vpop.eup %2783  ;;  %v873_v53 = vmul.f32 %v2782_v57, %v856_v63  ;;  %v3786_v42 = vmul.f32 2.0, %v4953_v49  ;;  %vm888_vm10 = vcmp.eq.f32.partialorder %v3739_v33, inf }
 0x1e9   :  { %2787 = vrsqrt.f32 %v3746_v30  ;;  %v880_v34 = vmul.f32 %v2784_v14, %v3737_v25  ;;  %vm890_vm11 = vcmp.eq.f32.partialorder %v3739_v33, 0.0  ;;  %vm895_vm6 = vcmp.eq.f32.partialorder %v3746_v30, inf }
 0x1ea   :  { %2789 = vrsqrt.f32 %v3749_v52  ;;  %v875_v60 = vsel %vm874_vm7, %v856_v63, %v873_v53  ;;  %v891_v14 = vand.u32 2147483648, %v3739_v33  ;;  %vm902_vm5 = vcmp.eq.f32.partialorder %v3749_v52, inf }
 0x1eb   :  { %2791 = vrsqrt.f32 %v3752_v13  ;;  %v882_v47 = vsel %vm881_vm8, %v3737_v25, %v880_v34  ;;  %v3803_v35 = vsel %vm876_vm0, %v877_v43, %v875_v60  ;;  %vm909_vm7 = vcmp.eq.f32.partialorder %v3752_v13, inf }
 0x1ec   :  { %2793 = vrsqrt.f32 %v3755_v18  ;;  %vm923_vm8 = vcmp.eq.f32.partialorder %v3755_v18, inf  ;;  %v2415_v49 = vadd.s32 4286578688, %v3654_v4  ;;  %v3813_v0 = vsel %vm883_vm9, %v884_v46, %v882_v47 }
 0x1ed   :  { %2795 = vrsqrt.f32 %v3758_v54  ;;  %v926_v53 = vand.u32 2147483648, %v3755_v18  ;;  %v919_v4 = vand.u32 2147483648, %v3758_v54  ;;  %v2414_v43 = vadd.s32 4286578688, %v3662_v5 }
 0x1ee   :  { %vm897_vm9 = vcmp.eq.f32.partialorder %v3746_v30, 0.0  ;;  %vm911_vm4 = vcmp.eq.f32.partialorder %v3752_v13, 0.0  ;;  %vm918_vm2 = vcmp.eq.f32.partialorder %v3758_v54, 0.0 }
 0x1f2   :  { %v2786_v1 = vpop.eup %2785 }
 0x1f3   :  { %v887_v57 = vmul.f32 %v2786_v1, %v3739_v33  ;;  %v2788_v45 = vpop.eup %2787 }
 0x1f4   :  { %v2790_v1 = vpop.eup %2789  ;;  %v894_v34 = vmul.f32 %v2788_v45, %v3746_v30 }
 0x1f5   :  { %v889_v51 = vsel %vm888_vm10, %v3739_v33, %v887_v57  ;;  %v2792_v20 = vpop.eup %2791  ;;  %vm916_vm10 = vcmp.eq.f32.partialorder %v3758_v54, inf  ;;  %v2417_v33 = vadd.s32 4286578688, %v3668_v7  ;;  %v2416_v7 = vadd.s32 4286578688, %v3672_v16 }
 0x1f6   :  { %v2794_v57 = vpop.eup %2793  ;;  %v3821_v63 = vsel %vm890_vm11, %v891_v14, %v889_v51  ;;  %v901_v51 = vmul.f32 %v2790_v1, %v3749_v52  ;;  %vm904_vm11 = vcmp.eq.f32.partialorder %v3749_v52, 0.0  ;;  %v896_v47 = vsel %vm895_vm6, %v3746_v30, %v894_v34 }
 0x1f7   :  { %v2796_v45 = vpop.eup %2795  ;;  %v908_v14 = vmul.f32 %v2792_v20, %v3752_v13  ;;  %v922_v50 = vmul.f32 %v2794_v57, %v3755_v18  ;;  %v3847_v1 = vand.u32 4294967232, %v2415_v49  ;;  %v3858_v34 = vand.u32 4294967232, %v2414_v43 }
 0x1f8   :  { %v915_v20 = vmul.f32 %v2796_v45, %v3758_v54  ;;  %v2419_v49 = vadd.s32 4286578688, %v3684_v24  ;;  %v3867_v16 = vand.u32 4294967232, %v2417_v33  ;;  %v903_v24 = vsel %vm902_vm5, %v3749_v52, %v901_v51 }
 0x1f9   :  { %v924_v33 = vsel %vm923_vm8, %v3755_v18, %v922_v50 }
 0x1fa   :  { %v917_v50 = vsel %vm916_vm10, %v3758_v54, %v915_v20  ;;  %v4962_v20 = vand.u32 2147483648, %v3749_v52  ;;  %v1973_v28 = vand.u32 2147483648, %v3867_v16 }
 0x1fb   :  { %v3942_v52 = vsel %vm918_vm2, %v919_v4, %v917_v50 }
 0x247   :  { %v3809_v56 = vpop.xlane.xlu0 %1049 }
 0x248   :  { %4954 = vst [vmem:[#allocation3_spill] sm:$0xff] %v3809_v56  ;;  %v2373_v60 = vadd.s32 4286578688, %v3809_v56  ;;  %vm4899_vm0 = vcmp.eq.f32.partialorder %v3550_v6, %v3809_v56  ;;  %v3849_v15 = vpop.xlane.xlu1 %1052 }
 0x249   :  { %v3830_v25 = vsel %vm4899_vm0, 3.4028235e+38, %v3550_v6  ;;  %vm925_vm0 = vcmp.eq.f32.partialorder %v3755_v18, 0.0  ;;  %4956 = vst [vmem:[#allocation23_spill] sm:$0xff] %v3849_v15  ;;  %vm4905_vm6 = vcmp.eq.f32.partialorder %v3566_v12, %v3849_v15 }
 0x24a   :  { %4955 = vst [vmem:[#allocation22_spill] sm:$0xff] %v3830_v25  ;;  %v3837_v46 = vand.u32 4294967232, %v2373_v60  ;;  %v1280_v5 = vsel %vm815_vm3, %v3830_v25, inf  ;;  %v2374_v60 = vadd.s32 4286578688, %v3849_v15  ;;  %v3865_v57 = vsel %vm4905_vm6, 3.4028235e+38, %v3566_v12 }
 0x24b   :  { %1281 = vmin.xlane.f32.xlu0 %v1280_v5  ;;  %4957 = vst [vmem:[#allocation24_spill] sm:$0xff] %v3865_v57  ;;  %v2418_v5 = vadd.s32 4286578688, %v3690_v26  ;;  %v1283_v56 = vsel %vm815_vm3, %v3865_v57, inf  ;;  %v3874_v45 = vpop.xlane.xlu0 %1055  ;;  %v910_v26 = vsel %vm909_vm7, %v3752_v13, %v908_v14 }
 0x24c   :  { %2797 = vrsqrt.f32 %v3837_v46  ;;  %v3870_v25 = vand.u32 4294967232, %v2374_v60  ;;  %4958 = vst [vmem:[#allocation25_spill] sm:$0xff] %v3874_v45  ;;  %1284 = vmin.xlane.f32.xlu1 %v1283_v56  ;;  %v2375_v43 = vadd.s32 4286578688, %v3874_v45  ;;  %vm1170_vm6 = vcmp.eq.f32.partialorder %v3576_v61, %v3874_v45  ;;  %v3929_v6 = vpop.xlane.xlu1 %1058 }
 0x24d   :  { %2799 = vrsqrt.f32 %v3847_v1  ;;  %v3889_v60 = vand.u32 4294967232, %v2416_v7  ;;  %v3893_v56 = vand.u32 4294967232, %v2419_v49  ;;  %v3901_v57 = vsel %vm1170_vm6, 3.4028235e+38, %v3576_v61  ;;  %4963 = vst [vmem:[#allocation27_spill] sm:$0xff] %v3929_v6 }
 0x24e   :  { %2801 = vrsqrt.f32 %v3870_v25  ;;  %v3895_v51 = vand.u32 4294967232, %v2375_v43  ;;  %4959 = vst [vmem:[#allocation26_spill] sm:$0xff] %v3901_v57  ;;  %v3907_v14 = vand.u32 4294967232, %v2418_v5  ;;  %v1286_v7 = vsel %vm815_vm3, %v3901_v57, inf }
 0x24f   :  { %2803 = vrsqrt.f32 %v3858_v34  ;;  %v4960_v49 = vand.u32 2147483648, %v3746_v30  ;;  %v4961_v45 = vand.u32 2147483648, %v3752_v13  ;;  %v3927_v5 = vsel %vm904_vm11, %v4962_v20, %v903_v24  ;;  %1287 = vmin.xlane.f32.xlu0 %v1286_v7  ;;  %v3958_v4 = vpop.xlane.xlu0 %1061 }
 0x250   :  { %2805 = vrsqrt.f32 %v3867_v16  ;;  %v3934_v30 = vsel %vm925_vm0, %v926_v53, %v924_v33  ;;  %v2376_v13 = vadd.s32 4286578688, %v3929_v6  ;;  %vm1106_vm5 = vcmp.eq.f32.partialorder %v3837_v46, inf  ;;  %4965 = vst [vmem:[#allocation29_spill] sm:$0xff] %v3958_v4  ;;  %v3963_v33 = vpop.xlane.xlu1 %1064 }
 0x251   :  { %v3915_v43 = vsel %vm897_vm9, %v4960_v49, %v896_v47  ;;  %v3921_v61 = vsel %vm911_vm4, %v4961_v45, %v910_v26  ;;  %2807 = vrsqrt.f32 %v3895_v51  ;;  %vm1171_vm4 = vcmp.eq.f32.partialorder %v3594_v44, %v3929_v6  ;;  %4966 = vst [vmem:[#allocation30_spill] sm:$0xff] %v3963_v33 }
 0x252   :  { %2809 = vrsqrt.f32 %v3889_v60  ;;  %v3950_v18 = vsel %vm1171_vm4, 3.4028235e+38, %v3594_v44  ;;  %v3954_v45 = vand.u32 4294967232, %v2376_v13  ;;  %vm1108_vm2 = vcmp.eq.f32.partialorder %v3837_v46, 0.0 }
 0x253   :  { %2811 = vrsqrt.f32 %v3893_v56  ;;  %4964 = vst [vmem:[#allocation28_spill] sm:$0xff] %v3950_v18  ;;  %v1289_v54 = vsel %vm815_vm3, %v3950_v18, inf  ;;  %v1109_v26 = vand.u32 2147483648, %v3837_v46  ;;  %v2377_v50 = vadd.s32 4286578688, %v3958_v4 }
 0x254   :  { %2813 = vrsqrt.f32 %v3907_v14  ;;  %1290 = vmin.xlane.f32.xlu1 %v1289_v54  ;;  %vm1113_vm7 = vcmp.eq.f32.partialorder %v3870_v25, inf  ;;  %vm1115_vm8 = vcmp.eq.f32.partialorder %v3870_v25, 0.0  ;;  %vm4919_vm0 = vcmp.eq.f32.partialorder %v3610_v9, %v3958_v4 }
 0x255   :  { %2815 = vrsqrt.f32 %v3954_v45  ;;  %v2378_v20 = vadd.s32 4286578688, %v3963_v33  ;;  %vm4930_vm10 = vcmp.eq.f32.partialorder %v3604_v32, %v3963_v33  ;;  %v3977_v13 = vand.u32 4294967232, %v2377_v50 }
 0x256   :  { %v2798_v53 = vpop.eup %2797  ;;  %v1116_v54 = vand.u32 2147483648, %v3870_v25  ;;  %vm1120_vm9 = vcmp.eq.f32.partialorder %v3895_v51, inf  ;;  %vm1122_vm11 = vcmp.eq.f32.partialorder %v3895_v51, 0.0  ;;  %v1123_v33 = vand.u32 2147483648, %v3895_v51 }
 0x257   :  { %v1105_v24 = vmul.f32 %v2798_v53, %v3837_v46  ;;  %v3971_v7 = vpop.eup %2799  ;;  %v3995_v6 = vand.u32 4294967232, %v2378_v20  ;;  %2817 = vrsqrt.f32 %v3977_v13  ;;  %v1130_v4 = vand.u32 2147483648, %v3954_v45 }
 0x258   :  { %v2802_v53 = vpop.eup %2801  ;;  %v1966_v58 = vand.u32 2147483648, %v3889_v60  ;;  %v1955_v37 = vmul.f32 %v3971_v7, %v3847_v1 }
 0x259   :  { %v1107_v49 = vsel %vm1106_vm5, %v3837_v46, %v1105_v24  ;;  %v3987_v24 = vsel %vm4930_vm10, 3.4028235e+38, %v3604_v32  ;;  %v3989_v18 = vpop.eup %2803  ;;  %v1112_v57 = vmul.f32 %v2802_v53, %v3870_v25  ;;  %v3998_v46 = vpop.xlane.xlu1 %1070  ;;  %vm1127_vm5 = vcmp.eq.f32.partialorder %v3954_v45, inf }
 0x25a   :  { %v1110_v47 = vsel %vm1108_vm2, %v1109_v26, %v1107_v49  ;;  %4967 = vst [vmem:[#allocation31_spill] sm:$0xff] %v3987_v24  ;;  %4969 = vst [vmem:[#allocation33_spill] sm:$0xff] %v3998_v46  ;;  %v4000_v26 = vpop.xlane.xlu0 %1067  ;;  %v4002_v49 = vpop.eup %2805  ;;  %v1295_v53 = vsel %vm815_vm3, %v3987_v24, inf  ;;  %vm1129_vm2 = vcmp.eq.f32.partialorder %v3954_v45, 0.0  ;;  %2819 = vrsqrt.f32 %v3995_v6 }
 0x25b   :  { %v3993_v50 = vadd.f32 %v1110_v47, %v3803_v35  ;;  %4970 = vst [vmem:[#allocation34_spill] sm:$0xff] %v4000_v26  ;;  %v4012_v35 = vsel %vm4919_vm0, 3.4028235e+38, %v3610_v9  ;;  %v2808_v47 = vpop.eup %2807  ;;  %v1114_v20 = vsel %vm1113_vm7, %v3870_v25, %v1112_v57  ;;  %1296 = vmin.xlane.f32.xlu1 %v1295_v53  ;;  %v2380_v32 = vadd.s32 4286578688, %v3998_v46 }
 0x25c   :  { %4971 = vst [vmem:[#allocation35_spill] sm:$0xff] %v4012_v35  ;;  %v1117_v24 = vsel %vm1115_vm8, %v1116_v54, %v1114_v20  ;;  %v1119_v9 = vmul.f32 %v2808_v47, %v3895_v51  ;;  %vm1134_vm7 = vcmp.eq.f32.partialorder %v3977_v13, inf  ;;  %vm4924_vm0 = vcmp.eq.f32.partialorder %v3626_v23, %v3998_v46 }
 0x25d   :  { %4968 = vst [vmem:[#allocation32_spill] sm:$0xff] %v3993_v50  ;;  %v4020_v50 = vpop.eup %2809  ;;  %v4030_v57 = vadd.f32 %v1117_v24, %v3813_v0  ;;  %v1292_v25 = vsel %vm815_vm3, %v4012_v35, inf  ;;  %v2379_v54 = vadd.s32 4286578688, %v4000_v26  ;;  %v212_v53 = vpop.xlane.xlu1 %211  ;;  %v4043_v0 = vand.u32 4294967232, %v2380_v32  ;;  %v4975_v32 = vld [vmem:[#allocation2_spill] sm:$0xff] }
 0x25e   :  { %v4027_v44 = vpop.eup %2811  ;;  %v209_v20 = vpop.xlane.xlu0 %208  ;;  %v1121_v15 = vsel %vm1120_vm9, %v3895_v51, %v1119_v9  ;;  %1293 = vmin.xlane.f32.xlu0 %v1292_v25  ;;  %vm4926_vm8 = vcmp.eq.f32.partialorder %v3632_v29, %v4000_v26  ;;  %v4051_v24 = vsel %vm4924_vm0, 3.4028235e+38, %v3626_v23  ;;  %v341_v12 = vadd.f32 %v4975_v32, %v212_v53 }
 0x25f   :  { %4972 = vst [vmem:[#allocation36_spill] sm:$0xff] %v4030_v57  ;;  %v4038_v47 = vpop.eup %2813  ;;  %4974 = vst [vmem:[#allocation38_spill] sm:$0xff] %v4051_v24  ;;  %v1124_v57 = vsel %vm1122_vm11, %v1123_v33, %v1121_v15  ;;  %v4055_v35 = vand.u32 4294967232, %v2379_v54  ;;  %v1301_v9 = vsel %vm815_vm3, %v4051_v24, inf  ;;  %vm1136_vm9 = vcmp.eq.f32.partialorder %v3977_v13, 0.0 }
 0x260   :  { %4973 = vst [vmem:[#allocation37_spill] sm:$0xff] %v4038_v47  ;;  %v2816_v25 = vpop.eup %2815  ;;  %v4061_v47 = vadd.f32 %v1124_v57, %v3821_v63  ;;  %v1137_v46 = vand.u32 2147483648, %v3977_v13  ;;  %2821 = vrsqrt.f32 %v4043_v0  ;;  %1302 = vmin.xlane.f32.xlu1 %v1301_v9  ;;  %vm1141_vm11 = vcmp.eq.f32.partialorder %v3995_v6, inf }
 0x261   :  { %v1126_v15 = vmul.f32 %v2816_v25, %v3954_v45  ;;  %vm1143_vm0 = vcmp.eq.f32.partialorder %v3995_v6, 0.0  ;;  %2823 = vrsqrt.f32 %v4055_v35  ;;  %v218_v51 = vpop.xlane.xlu1 %217  ;;  %v1144_v63 = vand.u32 2147483648, %v3995_v6  ;;  %v2818_v9 = vpop.eup %2817 }
 0x262   :  { %4976 = vst [vmem:[#allocation2_spill] sm:$0xff] %v4061_v47  ;;  %v215_v33 = vpop.xlane.xlu0 %214  ;;  %v357_v54 = vsub.f32 %v341_v12, %v3763_v8  ;;  %v4077_v53 = vsel %vm4926_vm8, 3.4028235e+38, %v3632_v29  ;;  %v340_v24 = vadd.f32 %v4975_v32, %v209_v20  ;;  %v343_v57 = vadd.f32 %v4975_v32, %v218_v51 }
 0x263   :  { %v1128_v25 = vsel %vm1127_vm5, %v3954_v45, %v1126_v15  ;;  %v1298_v47 = vsel %vm815_vm3, %v4077_v53, inf  ;;  %v1133_v8 = vmul.f32 %v2818_v9, %v3977_v13  ;;  %vm1155_vm8 = vcmp.eq.f32.partialorder %v4043_v0, inf }
 0x264   :  { %v1131_v12 = vsel %vm1129_vm2, %v1130_v4, %v1128_v25  ;;  %v365_v26 = vmax.f32 %v357_v54, 0.0  ;;  %1299 = vmin.xlane.f32.xlu0 %v1298_v47  ;;  %v342_v29 = vadd.f32 %v4975_v32, %v215_v33  ;;  %v2820_v23 = vpop.eup %2819  ;;  %vm1157_vm5 = vcmp.eq.f32.partialorder %v4043_v0, 0.0 }
 0x265   :  { %v4092_v15 = vadd.f32 %v1131_v12, %v3915_v43  ;;  %vm1148_vm10 = vcmp.eq.f32.partialorder %v4055_v35, inf  ;;  %v1151_v20 = vand.u32 2147483648, %v4055_v35  ;;  %v356_v45 = vsub.f32 %v340_v24, %v3766_v10  ;;  %v224_v51 = vpop.xlane.xlu1 %223 }
 0x266   :  { %v359_v4 = vsub.f32 %v343_v57, %v3769_v21  ;;  %v221_v9 = vpop.xlane.xlu0 %220  ;;  %v1140_v47 = vmul.f32 %v2820_v23, %v3995_v6  ;;  %v1135_v33 = vsel %vm1134_vm7, %v3977_v13, %v1133_v8  ;;  %vm1150_vm2 = vcmp.eq.f32.partialorder %v4055_v35, 0.0 }
 0x267   :  { %v4104_v43 = vmin.f32 %v365_v26, 1e+30  ;;  %v358_v54 = vsub.f32 %v342_v29, %v3773_v48  ;;  %v1138_v25 = vsel %vm1136_vm9, %v1137_v46, %v1135_v33  ;;  %v364_v10 = vmax.f32 %v356_v45, 0.0 }
 0x268   :  { %v367_v24 = vmax.f32 %v359_v4, 0.0  ;;  %v345_v21 = vadd.f32 %v4975_v32, %v224_v51  ;;  %v1142_v23 = vsel %vm1141_vm11, %v3995_v6, %v1140_v47  ;;  %v4114_v57 = vadd.f32 %v1138_v25, %v3927_v5 }
 0x269   :  { %v366_v12 = vmax.f32 %v358_v54, 0.0  ;;  %v344_v26 = vadd.f32 %v4975_v32, %v221_v9  ;;  %v1145_v29 = vsel %vm1143_vm0, %v1144_v63, %v1142_v23  ;;  %v4119_v48 = vmin.f32 %v364_v10, 1e+30  ;;  %v230_v8 = vpop.xlane.xlu1 %229 }
 0x26a   :  { %v4121_v13 = vmin.f32 %v367_v24, 1e+30  ;;  %v361_v46 = vsub.f32 %v345_v21, %v3776_v38  ;;  %v227_v45 = vpop.xlane.xlu0 %226  ;;  %v2822_v4 = vpop.eup %2821  ;;  %v4125_v51 = vadd.f32 %v1145_v29, %v3921_v61  ;;  %v945_v6 = vsel %vm937_vm13, %v4104_v43, 0.0 }
 0x26b   :  { %v4127_v5 = vmin.f32 %v366_v12, 1e+30  ;;  %v360_v47 = vsub.f32 %v344_v26, %v3779_v55  ;;  %v2824_v63 = vpop.eup %2823  ;;  %v1154_v9 = vmul.f32 %v2822_v4, %v4043_v0  ;;  %v955_v38 = vsel %vm815_vm3, %v945_v6, 0.0 }
 0x26c   :  { %v369_v33 = vmax.f32 %v361_v46, 0.0  ;;  %v944_v61 = vsel %vm936_vm12, %v4119_v48, 0.0  ;;  %v1147_v54 = vmul.f32 %v2824_v63, %v4055_v35  ;;  %956 = vadd.xlane.f32.xlu1 %v955_v38  ;;  %v347_v22 = vadd.f32 %v4975_v32, %v230_v8 }
 0x26d   :  { %v368_v25 = vmax.f32 %v360_v47, 0.0  ;;  %v952_v55 = vsel %vm815_vm3, %v944_v61, 0.0  ;;  %v1156_v40 = vsel %vm1155_vm8, %v4043_v0, %v1154_v9  ;;  %v346_v24 = vadd.f32 %v4975_v32, %v227_v45  ;;  %v4153_v39 = vpop.xlane.xlu1 %2031 }
 0x26e   :  { %v4146_v10 = vmin.f32 %v369_v33, 1e+30  ;;  %953 = vadd.xlane.f32.xlu0 %v952_v55  ;;  %v947_v2 = vsel %vm939_vm15, %v4121_v13, 0.0  ;;  %v4155_v21 = vpop.xlane.xlu0 %2028  ;;  %v4977_v23 = vand.u32 2147483648, %v4043_v0  ;;  %v1149_v26 = vsel %vm1148_vm10, %v4055_v35, %v1147_v54 }
 0x26f   :  { %v4164_v29 = vmin.f32 %v368_v25, 1e+30  ;;  %v363_v32 = vsub.f32 %v347_v22, %v3783_v36  ;;  %v1152_v3 = vsel %vm1150_vm2, %v1151_v20, %v1149_v26  ;;  %v362_v46 = vsub.f32 %v346_v24, %v3786_v42 }
 0x270   :  { %v1159_v12 = vsel %vm1157_vm5, %v4977_v23, %v1156_v40  ;;  %v961_v8 = vsel %vm815_vm3, %v947_v2, 0.0  ;;  %vm1956_vm12 = vcmp.eq.f32.partialorder %v3847_v1, inf  ;;  %v4176_v0 = vadd.f32 %v1152_v3, %v3942_v52 }
 0x271   :  { %v4168_v31 = vadd.f32 %v1159_v12, %v3934_v30  ;;  %v371_v45 = vmax.f32 %v363_v32, 0.0  ;;  %962 = vadd.xlane.f32.xlu1 %v961_v8  ;;  %v946_v36 = vsel %vm938_vm14, %v4127_v5, 0.0  ;;  %v2423_v30 = vadd.s32 4286578688, %v4153_v39  ;;  %v4187_v52 = vpop.xlane.xlu1 %2037 }
 0x272   :  { %vm1949_vm13 = vcmp.eq.f32.partialorder %v3858_v34, inf  ;;  %v1952_v42 = vand.u32 2147483648, %v3858_v34  ;;  %v370_v35 = vmax.f32 %v362_v46, 0.0  ;;  %v958_v20 = vsel %vm815_vm3, %v946_v36, 0.0  ;;  %v4189_v47 = vpop.xlane.xlu0 %2034  ;;  %v4981_v46 = vld [vmem:[#allocation37_spill] sm:$0xff] }
 0x273   :  { %v2422_v4 = vadd.s32 4286578688, %v4155_v21  ;;  %vm1970_vm15 = vcmp.eq.f32.partialorder %v3867_v16, inf  ;;  %v4193_v17 = vmin.f32 %v371_v45, 1e+30  ;;  %959 = vadd.xlane.f32.xlu0 %v958_v20  ;;  %v4195_v6 = vand.u32 4294967232, %v2423_v30 }
 0x274   :  { %v949_v63 = vsel %vm941_vm1, %v4146_v10, 0.0  ;;  %vm1958_vm14 = vcmp.eq.f32.partialorder %v3847_v1, 0.0  ;;  %v4202_v9 = vmin.f32 %v370_v35, 1e+30  ;;  %vm4978_vm0 = vcmp.eq.f32.partialorder %v3442_v41, %v3580_v19 }
 0x275   :  { %v4204_v33 = vand.u32 4294967232, %v2422_v4  ;;  %v967_v38 = vsel %vm815_vm3, %v949_v63, 0.0  ;;  %v948_v61 = vsel %vm4978_vm0, %v4164_v29, 0.0  ;;  %vm1951_vm10 = vcmp.eq.f32.partialorder %v3858_v34, 0.0  ;;  %v4225_v19 = vpop.xlane.xlu1 %2043  ;;  %v4983_v63 = vld [vmem:[#allocation5_spill] sm:$0xff] }
 0x276   :  { %vm1963_vm7 = vcmp.eq.f32.partialorder %v3889_v60, inf  ;;  %vm1984_vm1 = vcmp.eq.f32.partialorder %v3893_v56, inf  ;;  %2825 = vrsqrt.f32 %v4195_v6  ;;  %968 = vadd.xlane.f32.xlu1 %v967_v38  ;;  %v1948_v54 = vmul.f32 %v3989_v18, %v3858_v34  ;;  %v4232_v22 = vpop.xlane.xlu0 %2040  ;;  %v4984_v38 = vld [vmem:[#allocation23_spill] sm:$0xff] }
 0x277   :  { %v1969_v41 = vmul.f32 %v4002_v49, %v3867_v16  ;;  %vm1972_vm8 = vcmp.eq.f32.partialorder %v3867_v16, 0.0  ;;  %vm1965_vm9 = vcmp.eq.f32.partialorder %v3889_v60, 0.0  ;;  %2827 = vrsqrt.f32 %v4204_v33 }
 0x278   :  { %v1962_v25 = vmul.f32 %v4020_v50, %v3889_v60  ;;  %v964_v55 = vsel %vm815_vm3, %v948_v61, 0.0  ;;  %v2425_v7 = vadd.s32 4286578688, %v4187_v52  ;;  %v2424_v18 = vadd.s32 4286578688, %v4189_v47  ;;  %v4986_v61 = vld [vmem:[#allocation4_spill] sm:$0xff] }
 0x279   :  { %v1983_v49 = vmul.f32 %v4027_v44, %v3893_v56  ;;  %965 = vadd.xlane.f32.xlu0 %v964_v55  ;;  %vm4979_vm11 = vcmp.eq.f32.partialorder %v3471_v11, %v3598_v27  ;;  %vm4980_vm5 = vcmp.eq.f32.partialorder %v3462_v59, %v3612_v62  ;;  %v2427_v24 = vadd.s32 4286578688, %v4225_v19 }
 0x27a   :  { %v951_v40 = vsel %vm4979_vm11, %v4193_v17, 0.0  ;;  %v950_v50 = vsel %vm4980_vm5, %v4202_v9, 0.0  ;;  %v4245_v2 = vand.u32 4294967232, %v2425_v7  ;;  %v4247_v23 = vand.u32 4294967232, %v2424_v18 }
 0x27b   :  { %v973_v12 = vsel %vm815_vm3, %v951_v40, 0.0  ;;  %v970_v44 = vsel %vm815_vm3, %v950_v50, 0.0  ;;  %v1957_v11 = vsel %vm1956_vm12, %v3847_v1, %v1955_v37  ;;  %vm1986_vm2 = vcmp.eq.f32.partialorder %v3893_v56, 0.0  ;;  %v4987_v37 = vld [vmem:[#allocation3_spill] sm:$0xff] }
 0x27c   :  { %974 = vadd.xlane.f32.xlu1 %v973_v12  ;;  %v4255_v27 = vand.u32 4294967232, %v2427_v24  ;;  %v2426_v59 = vadd.s32 4286578688, %v4232_v22  ;;  %v1950_v62 = vsel %vm1949_vm13, %v3858_v34, %v1948_v54  ;;  %v1987_v26 = vand.u32 2147483648, %v3893_v56 }
 0x27d   :  { %vm1977_vm0 = vcmp.eq.f32.partialorder %v3907_v14, inf  ;;  %2829 = vrsqrt.f32 %v4245_v2  ;;  %v1971_v32 = vsel %vm1970_vm15, %v3867_v16, %v1969_v41  ;;  %v1964_v3 = vsel %vm1963_vm7, %v3889_v60, %v1962_v25  ;;  %971 = vadd.xlane.f32.xlu0 %v970_v44 }
 0x27e   :  { %v1976_v8 = vmul.f32 %v4981_v46, %v3907_v14  ;;  %2831 = vrsqrt.f32 %v4247_v23  ;;  %v4982_v45 = vand.u32 2147483648, %v3847_v1  ;;  %v1985_v30 = vsel %vm1984_vm1, %v3893_v56, %v1983_v49 }
 0x27f   :  { %v1980_v35 = vand.u32 2147483648, %v3907_v14  ;;  %2833 = vrsqrt.f32 %v4255_v27  ;;  %v1953_v20 = vsel %vm1951_vm10, %v1952_v42, %v1950_v62  ;;  %v4286_v4 = vand.u32 4294967232, %v2426_v59 }
 0x280   :  { %v1960_v36 = vsel %vm1958_vm14, %v4982_v45, %v1957_v11  ;;  %vm4985_vm12 = vcmp.eq.f32.partialorder %v4983_v63, %v4984_v38  ;;  %vm4988_vm13 = vcmp.eq.f32.partialorder %v4986_v61, %v4987_v37  ;;  %v2826_v41 = vpop.eup %2825  ;;  %v1974_v25 = vsel %vm1972_vm8, %v1973_v28, %v1971_v32  ;;  %v4995_v61 = vld [vmem:[#allocation30_spill] sm:$0xff] }
 0x281   :  { %v1177_v1 = vsel %vm4985_vm12, %v4104_v43, 0.0  ;;  %v1176_v54 = vsel %vm4988_vm13, %v4119_v48, 0.0  ;;  %v1967_v34 = vsel %vm1965_vm9, %v1966_v58, %v1964_v3  ;;  %v2828_v7 = vpop.eup %2827  ;;  %v1988_v18 = vsel %vm1986_vm2, %v1987_v26, %v1985_v30  ;;  %v4993_v26 = vld [vmem:[#allocation12_spill] sm:$0xff] }
 0x282   :  { %v1187_v42 = vsel %vm815_vm3, %v1177_v1, 0.0  ;;  %v1184_v55 = vsel %vm815_vm3, %v1176_v54, 0.0  ;;  %v4307_v49 = vsel %vm1977_vm0, %v3907_v14, %v1976_v8  ;;  %v2091_v40 = vmul.f32 %v2826_v41, %v4195_v6  ;;  %v4997_v54 = vld [vmem:[#allocation9_spill] sm:$0xff] }
 0x283   :  { %2835 = vrsqrt.f32 %v4286_v4  ;;  %1188 = vadd.xlane.f32.xlu1 %v1187_v42  ;;  %1185 = vadd.xlane.f32.xlu0 %v1184_v55  ;;  %vm2092_vm15 = vcmp.eq.f32.partialorder %v4195_v6, inf  ;;  %vm2094_vm14 = vcmp.eq.f32.partialorder %v4195_v6, 0.0  ;;  %v2095_v16 = vand.u32 2147483648, %v4195_v6  ;;  %v4998_v41 = vld [vmem:[#allocation29_spill] sm:$0xff] }
 0x284   :  { %v2084_v60 = vmul.f32 %v2828_v7, %v4204_v33  ;;  %v2093_v56 = vsel %vm2092_vm15, %v4195_v6, %v2091_v40  ;;  %vm2085_vm10 = vcmp.eq.f32.partialorder %v4204_v33, inf  ;;  %vm2087_vm7 = vcmp.eq.f32.partialorder %v4204_v33, 0.0 }
 0x285   :  { %v2088_v28 = vand.u32 2147483648, %v4204_v33  ;;  %v2096_v58 = vsel %vm2094_vm14, %v2095_v16, %v2093_v56  ;;  %v1179_v44 = vsel %vm1171_vm4, %v4121_v13, 0.0  ;;  %v1178_v62 = vsel %vm1170_vm6, %v4127_v5, 0.0 }
 0x286   :  { %v2086_v50 = vsel %vm2085_vm10, %v4204_v33, %v2084_v60  ;;  %v4328_v6 = vadd.f32 %v2096_v58, %v1960_v36  ;;  %vm2148_vm1 = vcmp.eq.f32.partialorder %v4993_v26, %v4153_v39  ;;  %vm2106_vm8 = vcmp.eq.f32.partialorder %v4245_v2, inf  ;;  %v5001_v58 = vld [vmem:[#allocation33_spill] sm:$0xff] }
 0x287   :  { %v2089_v32 = vsel %vm2087_vm7, %v2088_v28, %v2086_v50  ;;  %vm2108_vm9 = vcmp.eq.f32.partialorder %v4245_v2, 0.0  ;;  %v2830_v33 = vpop.eup %2829  ;;  %v2109_v46 = vand.u32 2147483648, %v4245_v2  ;;  %vm2099_vm4 = vcmp.eq.f32.partialorder %v4247_v23, inf  ;;  %v5000_v28 = vld [vmem:[#allocation10_spill] sm:$0xff]  ;;  %v5009_v39 = vld [vmem:[#allocation17_spill] sm:$0xff] }
 0x288   :  { %v4334_v3 = vadd.f32 %v2089_v32, %v1953_v20  ;;  %vm2101_vm11 = vcmp.eq.f32.partialorder %v4247_v23, 0.0  ;;  %v2832_v8 = vpop.eup %2831  ;;  %v2105_v45 = vmul.f32 %v2830_v33, %v4245_v2  ;;  %v2102_v36 = vand.u32 2147483648, %v4247_v23  ;;  %v4994_v20 = vld [vmem:[#allocation8_spill] sm:$0xff]  ;;  %v5003_v33 = vld [vmem:[#allocation11_spill] sm:$0xff] }
 0x289   :  { %v1193_v30 = vsel %vm815_vm3, %v1179_v44, 0.0  ;;  %v1190_v63 = vsel %vm815_vm3, %v1178_v62, 0.0  ;;  %v2834_v38 = vpop.eup %2833  ;;  %v2098_v1 = vmul.f32 %v2832_v8, %v4247_v23  ;;  %vm2120_vm6 = vcmp.eq.f32.partialorder %v4255_v27, inf }
 0x28a   :  { %1194 = vadd.xlane.f32.xlu1 %v1193_v30  ;;  %1191 = vadd.xlane.f32.xlu0 %v1190_v63  ;;  %vm4996_vm5 = vcmp.eq.f32.partialorder %v4994_v20, %v4995_v61  ;;  %vm4999_vm2 = vcmp.eq.f32.partialorder %v4997_v54, %v4998_v41  ;;  %v2107_v55 = vsel %vm2106_vm8, %v4245_v2, %v2105_v45  ;;  %vm2122_vm0 = vcmp.eq.f32.partialorder %v4255_v27, 0.0  ;;  %v4419_v61 = vpop.xlane.xlu0 %2046 }
 0x28b   :  { %v1181_v37 = vsel %vm4996_vm5, %v4146_v10, 0.0  ;;  %v1180_v42 = vsel %vm4999_vm2, %v4164_v29, 0.0  ;;  %v2119_v7 = vmul.f32 %v2834_v38, %v4255_v27  ;;  %v2123_v40 = vand.u32 2147483648, %v4255_v27  ;;  %v5007_v38 = vld [vmem:[#allocation14_spill] sm:$0xff] }
 0x28c   :  { %v2110_v16 = vsel %vm2108_vm9, %v2109_v46, %v2107_v55  ;;  %v2100_v60 = vsel %vm2099_vm4, %v4247_v23, %v2098_v1  ;;  %v1199_v56 = vsel %vm815_vm3, %v1181_v37, 0.0  ;;  %vm5002_vm12 = vcmp.eq.f32.partialorder %v5000_v28, %v5001_v58  ;;  %v5006_v23 = vld [vmem:[#allocation13_spill] sm:$0xff]  ;;  %v5013_v58 = vld [vmem:[#allocation22_spill] sm:$0xff] }
 0x28d   :  { %v1183_v50 = vsel %vm5002_vm12, %v4193_v17, 0.0  ;;  %v2836_v24 = vpop.eup %2835  ;;  %v4369_v12 = vadd.f32 %v2110_v16, %v1974_v25  ;;  %v2103_v44 = vsel %vm2101_vm11, %v2102_v36, %v2100_v60  ;;  %v2121_v2 = vsel %vm2120_vm6, %v4255_v27, %v2119_v7  ;;  %v5004_v25 = vld [vmem:[#allocation34_spill] sm:$0xff] }
 0x28e   :  { %v1196_v11 = vsel %vm815_vm3, %v1180_v42, 0.0  ;;  %v4377_v59 = vadd.f32 %v2103_v44, %v1967_v34  ;;  %v2124_v62 = vsel %vm2122_vm0, %v2123_v40, %v2121_v2  ;;  %v2112_v32 = vmul.f32 %v2836_v24, %v4286_v4  ;;  %1200 = vadd.xlane.f32.xlu1 %v1199_v56  ;;  %v5011_v42 = vld [vmem:[#allocation20_spill] sm:$0xff] }
 0x28f   :  { %1197 = vadd.xlane.f32.xlu0 %v1196_v11  ;;  %vm5005_vm13 = vcmp.eq.f32.partialorder %v5003_v33, %v5004_v25  ;;  %vm2147_vm15 = vcmp.eq.f32.partialorder %v5006_v23, %v4155_v21  ;;  %v4386_v8 = vadd.f32 %v2124_v62, %v1988_v18  ;;  %vm2113_vm14 = vcmp.eq.f32.partialorder %v4286_v4, inf  ;;  %v5014_v62 = vld [vmem:[#allocation24_spill] sm:$0xff] }
 0x290   :  { %v1182_v46 = vsel %vm5005_vm13, %v4202_v9, 0.0  ;;  %v2116_v27 = vand.u32 2147483648, %v4286_v4  ;;  %vm1979_vm10 = vcmp.eq.f32.partialorder %v3907_v14, 0.0  ;;  %v2114_v34 = vsel %vm2113_vm14, %v4286_v4, %v2112_v32  ;;  %v5008_v14 = vld [vmem:[#allocation15_spill] sm:$0xff] }
 0x291   :  { %vm2115_vm7 = vcmp.eq.f32.partialorder %v4286_v4, 0.0  ;;  %v1981_v45 = vsel %vm1979_vm10, %v1980_v35, %v4307_v49  ;;  %v1205_v30 = vsel %vm815_vm3, %v1183_v50, 0.0  ;;  %v1202_v21 = vsel %vm815_vm3, %v1182_v46, 0.0 }
 0x292   :  { %v2117_v36 = vsel %vm2115_vm7, %v2116_v27, %v2114_v34  ;;  %1206 = vadd.xlane.f32.xlu1 %v1205_v30  ;;  %v2156_v63 = vsel %vm2148_vm1, 3.4028235e+38, %v4993_v26  ;;  %v2155_v4 = vsel %vm2147_vm15, 3.4028235e+38, %v5006_v23  ;;  %vm2150_vm8 = vcmp.eq.f32.partialorder %v5007_v38, %v4187_v52  ;;  %v5010_v26 = vld [vmem:[#allocation18_spill] sm:$0xff]  ;;  %v4417_v52 = vpop.xlane.xlu1 %2049 }
 0x293   :  { %v4398_v18 = vadd.f32 %v2117_v36, %v1981_v45  ;;  %1203 = vadd.xlane.f32.xlu0 %v1202_v21  ;;  %vm2149_vm9 = vcmp.eq.f32.partialorder %v5008_v14, %v4189_v47  ;;  %v2166_v35 = vsel %vm815_vm3, %v2156_v63, inf  ;;  %v2163_v49 = vsel %vm815_vm3, %v2155_v4, inf  ;;  %v5015_v27 = vld [vmem:[#allocation26_spill] sm:$0xff]  ;;  %v5016_v21 = vld [vmem:[#allocation28_spill] sm:$0xff] }
 0x294   :  { %v2158_v1 = vsel %vm2150_vm8, 3.4028235e+38, %v5007_v38  ;;  %v2157_v20 = vsel %vm2149_vm9, 3.4028235e+38, %v5008_v14  ;;  %vm2152_vm1 = vcmp.eq.f32.partialorder %v5009_v39, %v4225_v19  ;;  %vm2151_vm4 = vcmp.eq.f32.partialorder %v5010_v26, %v4232_v22  ;;  %v5012_v19 = vld [vmem:[#allocation21_spill] sm:$0xff] }
 0x295   :  { %v2172_v47 = vsel %vm815_vm3, %v2158_v1, inf  ;;  %v2169_v37 = vsel %vm815_vm3, %v2157_v20, inf  ;;  %v2160_v54 = vsel %vm2152_vm1, 3.4028235e+38, %v5009_v39  ;;  %v2159_v41 = vsel %vm2151_vm4, 3.4028235e+38, %v5010_v26 }
 0x296   :  { %2167 = vmin.xlane.f32.xlu1 %v2166_v35  ;;  %vm2154_vm11 = vcmp.eq.f32.partialorder %v5011_v42, %v4417_v52  ;;  %vm2153_vm6 = vcmp.eq.f32.partialorder %v5012_v19, %v4419_v61  ;;  %v2178_v22 = vsel %vm815_vm3, %v2160_v54, inf  ;;  %v2175_v55 = vsel %vm815_vm3, %v2159_v41, inf  ;;  %v5017_v26 = vld [vmem:[#allocation31_spill] sm:$0xff] }
 0x297   :  { %2164 = vmin.xlane.f32.xlu0 %v2163_v49  ;;  %v2162_v7 = vsel %vm2154_vm11, 3.4028235e+38, %v5011_v42  ;;  %v2161_v40 = vsel %vm2153_vm6, 3.4028235e+38, %v5012_v19 }
 0x298   :  { %v2184_v16 = vsel %vm815_vm3, %v2162_v7, inf  ;;  %v2181_v60 = vsel %vm815_vm3, %v2161_v40, inf  ;;  %v5019_v40 = vld [vmem:[#allocation35_spill] sm:$0xff] }
 0x29a   :  { %2173 = vmin.xlane.f32.xlu1 %v2172_v47 }
 0x29b   :  { %2170 = vmin.xlane.f32.xlu0 %v2169_v37  ;;  %v5018_v37 = vld [vmem:[#allocation32_spill] sm:$0xff] }
 0x29e   :  { %2179 = vmin.xlane.f32.xlu1 %v2178_v22 }
 0x29f   :  { %2176 = vmin.xlane.f32.xlu0 %v2175_v55 }
 0x2a2   :  { %2185 = vmin.xlane.f32.xlu1 %v2184_v16 }
 0x2a3   :  { %2182 = vmin.xlane.f32.xlu0 %v2181_v60 }
 0x2d8   :  { %v1282_v56 = vpop.xlane.xlu0 %1281 }
 0x2d9   :  { %v2381_v28 = vadd.s32 4286578688, %v1282_v56  ;;  %vm1400_vm5 = vcmp.eq.f32.partialorder %v5013_v58, %v1282_v56  ;;  %v1285_v2 = vpop.xlane.xlu1 %1284 }
 0x2da   :  { %v1408_v50 = vsel %vm1400_vm5, %v4119_v48, 0.0  ;;  %v2382_v11 = vadd.s32 4286578688, %v1285_v2  ;;  %vm1401_vm2 = vcmp.eq.f32.partialorder %v5014_v62, %v1285_v2 }
 0x2db   :  { %v1320_v24 = vand.u32 4294967232, %v2381_v28  ;;  %v1416_v44 = vsel %vm815_vm3, %v1408_v50, 0.0  ;;  %v1409_v32 = vsel %vm1401_vm2, %v4104_v43, 0.0  ;;  %v5020_v28 = vld [vmem:[#allocation36_spill] sm:$0xff] }
 0x2dc   :  { %1417 = vadd.xlane.f32.xlu0 %v1416_v44  ;;  %v1321_v33 = vand.u32 4294967232, %v2382_v11  ;;  %v1419_v25 = vsel %vm815_vm3, %v1409_v32, 0.0  ;;  %v1288_v46 = vpop.xlane.xlu0 %1287  ;;  %v5021_v44 = vld [vmem:[#allocation38_spill] sm:$0xff] }
 0x2dd   :  { %2837 = vrsqrt.f32 %v1320_v24  ;;  %1420 = vadd.xlane.f32.xlu1 %v1419_v25  ;;  %v2383_v23 = vadd.s32 4286578688, %v1288_v46  ;;  %vm1402_vm0 = vcmp.eq.f32.partialorder %v5015_v27, %v1288_v46  ;;  %vm1338_vm13 = vcmp.eq.f32.partialorder %v1320_v24, inf }
 0x2de   :  { %2839 = vrsqrt.f32 %v1321_v33  ;;  %v1410_v48 = vsel %vm1402_vm0, %v4127_v5, 0.0  ;;  %v1341_v35 = vand.u32 2147483648, %v1320_v24  ;;  %vm1340_vm15 = vcmp.eq.f32.partialorder %v1320_v24, 0.0 }
 0x2df   :  { %v1322_v45 = vand.u32 4294967232, %v2383_v23  ;;  %v1422_v36 = vsel %vm815_vm3, %v1410_v48, 0.0  ;;  %vm1345_vm10 = vcmp.eq.f32.partialorder %v1321_v33, inf  ;;  %v1348_v41 = vand.u32 2147483648, %v1321_v33 }
 0x2e0   :  { %1423 = vadd.xlane.f32.xlu0 %v1422_v36  ;;  %vm1347_vm7 = vcmp.eq.f32.partialorder %v1321_v33, 0.0  ;;  %v5022_v36 = vld [vmem:[#allocation2_spill] sm:$0xff] }
 0x2e1   :  { %v1291_v34 = vpop.xlane.xlu1 %1290  ;;  %2841 = vrsqrt.f32 %v1322_v45  ;;  %vm1352_vm1 = vcmp.eq.f32.partialorder %v1322_v45, inf  ;;  %vm1354_vm4 = vcmp.eq.f32.partialorder %v1322_v45, 0.0  ;;  %v1355_v11 = vand.u32 2147483648, %v1322_v45 }
 0x2e2   :  { %v2384_v30 = vadd.s32 4286578688, %v1291_v34  ;;  %vm1403_vm12 = vcmp.eq.f32.partialorder %v5016_v21, %v1291_v34 }
 0x2e3   :  { %v1411_v4 = vsel %vm1403_vm12, %v4121_v13, 0.0 }
 0x2e4   :  { %v4445_v63 = vand.u32 4294967232, %v2384_v30  ;;  %v1425_v14 = vsel %vm815_vm3, %v1411_v4, 0.0 }
 0x2e5   :  { %1426 = vadd.xlane.f32.xlu1 %v1425_v14 }
 0x2e6   :  { %2843 = vrsqrt.f32 %v4445_v63  ;;  %vm1359_vm6 = vcmp.eq.f32.partialorder %v4445_v63, inf  ;;  %vm1361_vm5 = vcmp.eq.f32.partialorder %v4445_v63, 0.0 }
 0x2e7   :  { %v2838_v43 = vpop.eup %2837 }
 0x2e8   :  { %v1337_v38 = vmul.f32 %v2838_v43, %v1320_v24  ;;  %v1297_v49 = vpop.xlane.xlu1 %1296  ;;  %v2840_v1 = vpop.eup %2839 }
 0x2e9   :  { %v2386_v39 = vadd.s32 4286578688, %v1297_v49  ;;  %vm1405_vm14 = vcmp.eq.f32.partialorder %v5017_v26, %v1297_v49  ;;  %v1344_v47 = vmul.f32 %v2840_v1, %v1321_v33 }
 0x2ea   :  { %v1339_v5 = vsel %vm1338_vm13, %v1320_v24, %v1337_v38  ;;  %v1413_v13 = vsel %vm1405_vm14, %v4146_v10, 0.0 }
 0x2eb   :  { %v1342_v20 = vsel %vm1340_vm15, %v1341_v35, %v1339_v5  ;;  %v1325_v42 = vand.u32 4294967232, %v2386_v39  ;;  %v1294_v19 = vpop.xlane.xlu0 %1293  ;;  %v1431_v22 = vsel %vm815_vm3, %v1413_v13, 0.0  ;;  %v1346_v55 = vsel %vm1345_vm10, %v1321_v33, %v1344_v47  ;;  %v2842_v56 = vpop.eup %2841 }
 0x2ec   :  { %v4452_v54 = vadd.f32 %v1342_v20, %v5018_v37  ;;  %v2385_v7 = vadd.s32 4286578688, %v1294_v19  ;;  %vm1404_vm8 = vcmp.eq.f32.partialorder %v5019_v40, %v1294_v19  ;;  %1432 = vadd.xlane.f32.xlu1 %v1431_v22  ;;  %v1349_v16 = vsel %vm1347_vm7, %v1348_v41, %v1346_v55 }
 0x2ed   :  { %2845 = vrsqrt.f32 %v1325_v42  ;;  %v1303_v60 = vpop.xlane.xlu1 %1302  ;;  %v4458_v58 = vadd.f32 %v1349_v16, %v5020_v28  ;;  %v1351_v24 = vmul.f32 %v2842_v56, %v1322_v45  ;;  %v1412_v2 = vsel %vm1404_vm8, %v4164_v29, 0.0 }
 0x2ee   :  { %v1324_v10 = vand.u32 4294967232, %v2385_v7  ;;  %v2388_v50 = vadd.s32 4286578688, %v1303_v60  ;;  %vm1407_vm9 = vcmp.eq.f32.partialorder %v5021_v44, %v1303_v60  ;;  %v1428_v25 = vsel %vm815_vm3, %v1412_v2, 0.0 }
 0x2ef   :  { %v1353_v32 = vsel %vm1352_vm1, %v1322_v45, %v1351_v24  ;;  %v1415_v23 = vsel %vm1407_vm9, %v4193_v17, 0.0  ;;  %1429 = vadd.xlane.f32.xlu0 %v1428_v25  ;;  %v1362_v29 = vand.u32 2147483648, %v4445_v63  ;;  %vm1373_vm2 = vcmp.eq.f32.partialorder %v1325_v42, inf }
 0x2f0   :  { %2847 = vrsqrt.f32 %v1324_v10  ;;  %v2844_v62 = vpop.eup %2843  ;;  %v1327_v33 = vand.u32 4294967232, %v2388_v50  ;;  %v1356_v48 = vsel %vm1354_vm4, %v1355_v11, %v1353_v32  ;;  %v1437_v21 = vsel %vm815_vm3, %v1415_v23, 0.0 }
 0x2f1   :  { %v1300_v46 = vpop.xlane.xlu0 %1299  ;;  %v1358_v27 = vmul.f32 %v2844_v62, %v4445_v63  ;;  %v4469_v30 = vadd.f32 %v1356_v48, %v5022_v36  ;;  %1438 = vadd.xlane.f32.xlu1 %v1437_v21  ;;  %v1376_v5 = vand.u32 2147483648, %v1325_v42  ;;  %vm1375_vm0 = vcmp.eq.f32.partialorder %v1325_v42, 0.0 }
 0x2f2   :  { %v2387_v34 = vadd.s32 4286578688, %v1300_v46  ;;  %vm1406_vm11 = vcmp.eq.f32.partialorder %v4077_v53, %v1300_v46  ;;  %2849 = vrsqrt.f32 %v1327_v33  ;;  %vm1366_vm12 = vcmp.eq.f32.partialorder %v1324_v10, inf }
 0x2f3   :  { %v1360_v45 = vsel %vm1359_vm6, %v4445_v63, %v1358_v27  ;;  %v1414_v4 = vsel %vm1406_vm11, %v4202_v9, 0.0  ;;  %v1369_v26 = vand.u32 2147483648, %v1324_v10  ;;  %vm1387_vm13 = vcmp.eq.f32.partialorder %v1327_v33, inf }
 0x2f4   :  { %v1326_v17 = vand.u32 4294967232, %v2387_v34  ;;  %v1363_v43 = vsel %vm1361_vm5, %v1362_v29, %v1360_v45  ;;  %v1434_v14 = vsel %vm815_vm3, %v1414_v4, 0.0  ;;  %vm1368_vm3 = vcmp.eq.f32.partialorder %v1324_v10, 0.0 }
 0x2f5   :  { %v4476_v53 = vadd.f32 %v1363_v43, %v4092_v15  ;;  %1435 = vadd.xlane.f32.xlu0 %v1434_v14  ;;  %vm1389_vm15 = vcmp.eq.f32.partialorder %v1327_v33, 0.0  ;;  %vm2283_vm4 = vcmask 7168  }
 0x2f6   :  { %2851 = vrsqrt.f32 %v1326_v17  ;;  %vm1380_vm14 = vcmp.eq.f32.partialorder %v1326_v17, inf  ;;  %v1383_v56 = vand.u32 2147483648, %v1326_v17  ;;  %vm1382_vm10 = vcmp.eq.f32.partialorder %v1326_v17, 0.0 }
 0x2f7   :  { %v2846_v38 = vpop.eup %2845 }
 0x2f8   :  { %v1372_v35 = vmul.f32 %v2846_v38, %v1325_v42 }
 0x2f9   :  { %v4479_v49 = vpop.xlane.xlu1 %956 }
 0x2fa   :  { %v2848_v63 = vpop.eup %2847  ;;  %v1374_v1 = vsel %vm1373_vm2, %v1325_v42, %v1372_v35  ;;  %v1390_v42 = vand.u32 2147483648, %v1327_v33 }
 0x2fb   :  { %v4481_v20 = vpop.xlane.xlu0 %953  ;;  %v1377_v39 = vsel %vm1375_vm0, %v1376_v5, %v1374_v1  ;;  %v1365_v9 = vmul.f32 %v2848_v63, %v1324_v10 }
 0x2fc   :  { %v4484_v15 = vadd.f32 %v1377_v39, %v4125_v51  ;;  %v2850_v47 = vpop.eup %2849 }
 0x2fd   :  { %v1367_v37 = vsel %vm1366_vm12, %v1324_v10, %v1365_v9  ;;  %v1386_v19 = vmul.f32 %v2850_v47, %v1327_v33 }
 0x2fe   :  { %v4486_v13 = vpop.xlane.xlu1 %962  ;;  %v1370_v41 = vsel %vm1368_vm3, %v1369_v26, %v1367_v37 }
 0x2ff   :  { %v4489_v22 = vadd.f32 %v1370_v41, %v4114_v57  ;;  %v1388_v40 = vsel %vm1387_vm13, %v1327_v33, %v1386_v19 }
 0x300   :  { %v4491_v55 = vpop.xlane.xlu0 %959  ;;  %v2852_v7 = vpop.eup %2851  ;;  %v1391_v51 = vsel %vm1389_vm15, %v1390_v42, %v1388_v40 }
 0x301   :  { %v1379_v16 = vmul.f32 %v2852_v7, %v1326_v17  ;;  %v4496_v10 = vadd.f32 %v1391_v51, %v4168_v31 }
 0x303   :  { %v4493_v60 = vpop.xlane.xlu1 %968  ;;  %v1381_v28 = vsel %vm1380_vm14, %v1326_v17, %v1379_v16 }
 0x304   :  { %v1384_v57 = vsel %vm1382_vm10, %v1383_v56, %v1381_v28 }
 0x305   :  { %v4501_v24 = vadd.f32 %v1384_v57, %v4176_v0 }
 0x306   :  { %v4498_v50 = vpop.xlane.xlu0 %965 }
 0x309   :  { %v4503_v44 = vpop.xlane.xlu1 %974 }
 0x30a   :  { %v4505_v2 = vpop.xlane.xlu0 %971 }
 0x310   :  { %v4507_v11 = vpop.xlane.xlu1 %1188  ;;  %v4509_v62 = vpop.xlane.xlu0 %1185 }
 0x317   :  { %v4511_v32 = vpop.xlane.xlu1 %1194  ;;  %v4513_v33 = vpop.xlane.xlu0 %1191 }
 0x31b   :  { %v4515_v31 = vpop.xlane.xlu1 %1200 }
 0x31c   :  { %v4517_v25 = vpop.xlane.xlu0 %1197 }
 0x31f   :  { %v4519_v46 = vpop.xlane.xlu1 %1206 }
 0x320   :  { %v4521_v0 = vpop.xlane.xlu0 %1203 }
 0x323   :  { %v2168_v23 = vpop.xlane.xlu1 %2167 }
 0x324   :  { %v2165_v27 = vpop.xlane.xlu0 %2164  ;;  %v2431_v48 = vadd.s32 4286578688, %v2168_v23 }
 0x325   :  { %v2430_v34 = vadd.s32 4286578688, %v2165_v27 }
 0x326   :  { %v2204_v29 = vand.u32 4294967232, %v2431_v48 }
 0x327   :  { %v2203_v36 = vand.u32 4294967232, %v2430_v34  ;;  %v2174_v45 = vpop.xlane.xlu1 %2173 }
 0x328   :  { %v2171_v17 = vpop.xlane.xlu0 %2170  ;;  %2853 = vrsqrt.f32 %v2204_v29  ;;  %v2433_v4 = vadd.s32 4286578688, %v2174_v45  ;;  %vm2228_vm7 = vcmp.eq.f32.partialorder %v2204_v29, inf  ;;  %v2231_v37 = vand.u32 2147483648, %v2204_v29 }
 0x329   :  { %2855 = vrsqrt.f32 %v2203_v36  ;;  %v2432_v38 = vadd.s32 4286578688, %v2171_v17  ;;  %vm2230_vm8 = vcmp.eq.f32.partialorder %v2204_v29, 0.0  ;;  %vm2221_vm9 = vcmp.eq.f32.partialorder %v2203_v36, inf }
 0x32a   :  { %v2206_v5 = vand.u32 4294967232, %v2433_v4  ;;  %v2224_v42 = vand.u32 2147483648, %v2203_v36  ;;  %vm2223_vm1 = vcmp.eq.f32.partialorder %v2203_v36, 0.0 }
 0x32b   :  { %v2180_v21 = vpop.xlane.xlu1 %2179  ;;  %v2205_v63 = vand.u32 4294967232, %v2432_v38 }
 0x32c   :  { %v2177_v43 = vpop.xlane.xlu0 %2176  ;;  %v2435_v14 = vadd.s32 4286578688, %v2180_v21  ;;  %2857 = vrsqrt.f32 %v2206_v5  ;;  %vm2242_vm11 = vcmp.eq.f32.partialorder %v2206_v5, inf  ;;  %vm2244_vm6 = vcmp.eq.f32.partialorder %v2206_v5, 0.0 }
 0x32d   :  { %v2434_v35 = vadd.s32 4286578688, %v2177_v43  ;;  %2859 = vrsqrt.f32 %v2205_v63  ;;  %v2245_v34 = vand.u32 2147483648, %v2206_v5  ;;  %vm2235_vm5 = vcmp.eq.f32.partialorder %v2205_v63, inf }
 0x32e   :  { %v2208_v1 = vand.u32 4294967232, %v2435_v14  ;;  %vm2237_vm2 = vcmp.eq.f32.partialorder %v2205_v63, 0.0 }
 0x32f   :  { %v2207_v39 = vand.u32 4294967232, %v2434_v35 }
 0x330   :  { %2861 = vrsqrt.f32 %v2208_v1  ;;  %vm2256_vm0 = vcmp.eq.f32.partialorder %v2208_v1, inf  ;;  %vm2258_vm12 = vcmp.eq.f32.partialorder %v2208_v1, 0.0 }
 0x331   :  { %2863 = vrsqrt.f32 %v2207_v39  ;;  %vm2249_vm3 = vcmp.eq.f32.partialorder %v2207_v39, inf  ;;  %v2252_v35 = vand.u32 2147483648, %v2207_v39  ;;  %vm2251_vm13 = vcmp.eq.f32.partialorder %v2207_v39, 0.0 }
 0x332   :  { %v2854_v9 = vpop.eup %2853 }
 0x333   :  { %v2856_v26 = vpop.eup %2855  ;;  %v2227_v47 = vmul.f32 %v2854_v9, %v2204_v29 }
 0x334   :  { %v2220_v41 = vmul.f32 %v2856_v26, %v2203_v36 }
 0x335   :  { %v2229_v19 = vsel %vm2228_vm7, %v2204_v29, %v2227_v47 }
 0x336   :  { %v2232_v7 = vsel %vm2230_vm8, %v2231_v37, %v2229_v19  ;;  %v2222_v40 = vsel %vm2221_vm9, %v2203_v36, %v2220_v41  ;;  %v2858_v28 = vpop.eup %2857  ;;  %v2238_v36 = vand.u32 2147483648, %v2205_v63 }
 0x337   :  { %v2276_v51 = vadd.f32 %v2232_v7, %v4328_v6  ;;  %v2225_v16 = vsel %vm2223_vm1, %v2224_v42, %v2222_v40  ;;  %v2860_v27 = vpop.eup %2859  ;;  %v2241_v48 = vmul.f32 %v2858_v28, %v2206_v5  ;;  %v5024_v42 = vld [vmem:[#allocation19_spill] sm:$0xff] }
 0x338   :  { %v2275_v56 = vadd.f32 %v2225_v16, %v4334_v3  ;;  %v2234_v29 = vmul.f32 %v2860_v27, %v2205_v63 }
 0x339   :  { %v4527_v57 = vsel %vm2283_vm4, %v4458_v58, %v2276_v51  ;;  %v2243_v45 = vsel %vm2242_vm11, %v2206_v5, %v2241_v48  ;;  %v2259_v58 = vand.u32 2147483648, %v2208_v1 }
 0x33a   :  { %v4531_v23 = vsel %vm2283_vm4, %v4452_v54, %v2275_v56  ;;  %v2862_v6 = vpop.eup %2861  ;;  %v2246_v21 = vsel %vm2244_vm6, %v2245_v34, %v2243_v45  ;;  %v2236_v43 = vsel %vm2235_vm5, %v2205_v63, %v2234_v29  ;;  %vm985_vm6 = vcmp.eq.f32.partialorder %v4479_v49, inf }
 0x33b   :  { %v2864_v3 = vpop.eup %2863  ;;  %v2255_v17 = vmul.f32 %v2862_v6, %v2208_v1  ;;  %v2278_v54 = vadd.f32 %v2246_v21, %v4369_v12  ;;  %v2239_v38 = vsel %vm2237_vm2, %v2238_v36, %v2236_v43  ;;  %vm987_vm5 = vcmp.eq.f32.partialorder %v4479_v49, 0.0 }
 0x33c   :  { %v2248_v4 = vmul.f32 %v2864_v3, %v2207_v39  ;;  %v2277_v9 = vadd.f32 %v2239_v38, %v4377_v59  ;;  %vm978_vm2 = vcmp.eq.f32.partialorder %v4481_v20, inf }
 0x33d   :  { %v2257_v14 = vsel %vm2256_vm0, %v2208_v1, %v2255_v17  ;;  %v4538_v41 = vsel %vm2283_vm4, %v4476_v53, %v2278_v54  ;;  %v5023_v53 = vld [vmem:[#allocation16_spill] sm:$0xff]  ;;  %vm980_vm0 = vcmp.eq.f32.partialorder %v4481_v20, 0.0 }
 0x33e   :  { %v2260_v26 = vsel %vm2258_vm12, %v2259_v58, %v2257_v14  ;;  %v2250_v47 = vsel %vm2249_vm3, %v2207_v39, %v2248_v4  ;;  %v4543_v12 = vsel %vm2283_vm4, %v4469_v30, %v2277_v9  ;;  %v2428_v39 = vadd.s32 4286578688, %v4419_v61 }
 0x33f   :  { %v2280_v37 = vadd.f32 %v2260_v26, %v4386_v8  ;;  %v2253_v5 = vsel %vm2251_vm13, %v2252_v35, %v2250_v47  ;;  %v2429_v8 = vadd.s32 4286578688, %v4417_v52  ;;  %v2421_v19 = vadd.s32 4286578688, %v5023_v53 }
 0x340   :  { %v2279_v63 = vadd.f32 %v2253_v5, %v4398_v18  ;;  %v2420_v18 = vadd.s32 4286578688, %v5024_v42  ;;  %v2073_v40 = vand.u32 4294967232, %v2428_v39  ;;  %v988_v47 = vand.u32 2147483648, %v4479_v49 }
 0x341   :  { %v4547_v1 = vsel %vm2283_vm4, %v4484_v15, %v2280_v37  ;;  %v2074_v7 = vand.u32 4294967232, %v2429_v8  ;;  %v1938_v30 = vand.u32 4294967232, %v2421_v19  ;;  %v4575_v37 = vpop.xlane.xlu0 %2182  ;;  %vm999_vm12 = vcmp.eq.f32.partialorder %v4486_v13, inf }
 0x342   :  { %v4551_v59 = vsel %vm2283_vm4, %v4489_v22, %v2279_v63  ;;  %v1937_v51 = vand.u32 4294967232, %v2420_v18  ;;  %vm2127_vm10 = vcmp.eq.f32.partialorder %v2073_v40, inf  ;;  %v2130_v36 = vand.u32 2147483648, %v2073_v40 }
 0x343   :  { %2865 = vrsqrt.f32 %v2074_v7  ;;  %vm1998_vm15 = vcmp.eq.f32.partialorder %v1938_v30, inf  ;;  %vm2134_vm14 = vcmp.eq.f32.partialorder %v2074_v7, inf  ;;  %v2137_v29 = vand.u32 2147483648, %v2074_v7 }
 0x344   :  { %2867 = vrsqrt.f32 %v2073_v40  ;;  %vm1991_vm7 = vcmp.eq.f32.partialorder %v1937_v51, inf  ;;  %vm2136_vm8 = vcmp.eq.f32.partialorder %v2074_v7, 0.0  ;;  %vm2129_vm9 = vcmp.eq.f32.partialorder %v2073_v40, 0.0 }
 0x345   :  { %2869 = vrsqrt.f32 %v1938_v30  ;;  %v2001_v45 = vand.u32 2147483648, %v1938_v30  ;;  %v1994_v17 = vand.u32 2147483648, %v1937_v51  ;;  %vm2000_vm1 = vcmp.eq.f32.partialorder %v1938_v30, 0.0 }
 0x346   :  { %2871 = vrsqrt.f32 %v1937_v51  ;;  %vm1993_vm11 = vcmp.eq.f32.partialorder %v1937_v51, 0.0  ;;  %v981_v63 = vand.u32 2147483648, %v4481_v20  ;;  %vm1001_vm3 = vcmp.eq.f32.partialorder %v4486_v13, 0.0 }
 0x347   :  { %2873 = vrsqrt.f32 %v4479_v49  ;;  %v1002_v53 = vand.u32 2147483648, %v4486_v13  ;;  %vm992_vm13 = vcmp.eq.f32.partialorder %v4491_v55, inf }
 0x348   :  { %2875 = vrsqrt.f32 %v4481_v20 }
 0x349   :  { %2877 = vrsqrt.f32 %v4486_v13 }
 0x34a   :  { %2879 = vrsqrt.f32 %v4491_v55 }
 0x34b   :  { %2881 = vrsqrt.f32 %v4493_v60 }
 0x34c   :  { %2883 = vrsqrt.f32 %v4498_v50 }
 0x34d   :  { %v2866_v15 = vpop.eup %2865  ;;  %2885 = vrsqrt.f32 %v4503_v44 }
 0x34e   :  { %v2868_v16 = vpop.eup %2867  ;;  %v2133_v61 = vmul.f32 %v2866_v15, %v2074_v7  ;;  %2887 = vrsqrt.f32 %v4509_v62 }
 0x34f   :  { %v2870_v22 = vpop.eup %2869  ;;  %v2126_v56 = vmul.f32 %v2868_v16, %v2073_v40  ;;  %2889 = vrsqrt.f32 %v4507_v11 }
 0x350   :  { %v2872_v52 = vpop.eup %2871  ;;  %v1997_v28 = vmul.f32 %v2870_v22, %v1938_v30  ;;  %v2135_v48 = vsel %vm2134_vm14, %v2074_v7, %v2133_v61  ;;  %2891 = vrsqrt.f32 %v4505_v2  ;;  %v995_v7 = vand.u32 2147483648, %v4491_v55 }
 0x351   :  { %v1990_v27 = vmul.f32 %v2872_v52, %v1937_v51  ;;  %v2128_v34 = vsel %vm2127_vm10, %v2073_v40, %v2126_v56  ;;  %v2138_v58 = vsel %vm2136_vm8, %v2137_v29, %v2135_v48  ;;  %v2874_v43 = vpop.eup %2873  ;;  %vm1013_vm14 = vcmp.eq.f32.partialorder %v4493_v60, inf }
 0x352   :  { %v1999_v6 = vsel %vm1998_vm15, %v1938_v30, %v1997_v28  ;;  %v2131_v21 = vsel %vm2129_vm9, %v2130_v36, %v2128_v34  ;;  %v2876_v4 = vpop.eup %2875  ;;  %v984_v5 = vmul.f32 %v2874_v43, %v4479_v49  ;;  %vm994_vm15 = vcmp.eq.f32.partialorder %v4491_v55, 0.0 }
 0x353   :  { %v1992_v3 = vsel %vm1991_vm7, %v1937_v51, %v1990_v27  ;;  %v2002_v54 = vsel %vm2000_vm1, %v2001_v45, %v1999_v6  ;;  %v2878_v14 = vpop.eup %2877  ;;  %v977_v39 = vmul.f32 %v2876_v4, %v4481_v20  ;;  %vm1015_vm10 = vcmp.eq.f32.partialorder %v4493_v60, 0.0  ;;  %v2186_v51 = vpop.xlane.xlu1 %2185 }
 0x354   :  { %v1995_v38 = vsel %vm1993_vm11, %v1994_v17, %v1992_v3  ;;  %v4565_v35 = vadd.f32 %v2138_v58, %v2002_v54  ;;  %v2880_v26 = vpop.eup %2879  ;;  %v998_v42 = vmul.f32 %v2878_v14, %v4486_v13  ;;  %v1016_v30 = vand.u32 2147483648, %v4493_v60 }
 0x355   :  { %v4567_v9 = vadd.f32 %v2131_v21, %v1995_v38  ;;  %v2882_v8 = vpop.eup %2881  ;;  %v991_v18 = vmul.f32 %v2880_v26, %v4491_v55  ;;  %2893 = vrsqrt.f32 %v4513_v33  ;;  %v986_v22 = vsel %vm985_vm6, %v4479_v49, %v984_v5 }
 0x356   :  { %v2884_v19 = vpop.eup %2883  ;;  %vm1006_vm7 = vcmp.eq.f32.partialorder %v4498_v50, inf  ;;  %vm1008_vm8 = vcmp.eq.f32.partialorder %v4498_v50, 0.0  ;;  %v979_v52 = vsel %vm978_vm2, %v4481_v20, %v977_v39  ;;  %v1012_v61 = vmul.f32 %v2882_v8, %v4493_v60 }
 0x357   :  { %v2886_v40 = vpop.eup %2885  ;;  %v1009_v56 = vand.u32 2147483648, %v4498_v50  ;;  %v1000_v28 = vsel %vm999_vm12, %v4486_v13, %v998_v42  ;;  %v993_v27 = vsel %vm992_vm13, %v4491_v55, %v991_v18  ;;  %v1005_v48 = vmul.f32 %v2884_v19, %v4498_v50 }
 0x358   :  { %v2888_v16 = vpop.eup %2887  ;;  %vm1027_vm9 = vcmp.eq.f32.partialorder %v4503_v44, inf  ;;  %v4617_v34 = vsel %vm987_vm5, %v988_v47, %v986_v22  ;;  %v1026_v6 = vmul.f32 %v2886_v40, %v4503_v44  ;;  %vm1029_vm1 = vcmp.eq.f32.partialorder %v4503_v44, 0.0 }
 0x359   :  { %v1209_v29 = vmul.f32 %v2888_v16, %v4509_v62  ;;  %v2890_v3 = vpop.eup %2889  ;;  %v982_v45 = vsel %vm980_vm0, %v981_v63, %v979_v52  ;;  %v1030_v17 = vand.u32 2147483648, %v4503_v44  ;;  %v1023_v58 = vand.u32 2147483648, %v4505_v2 }
 0x35a   :  { %v4631_v49 = vsel %vm1001_vm3, %v1002_v53, %v1000_v28  ;;  %v4635_v21 = vsel %vm994_vm15, %v995_v7, %v993_v27  ;;  %v1014_v43 = vsel %vm1013_vm14, %v4493_v60, %v1012_v61  ;;  %vm1217_vm11 = vcmp.eq.f32.partialorder %v4507_v11, inf  ;;  %v2892_v20 = vpop.eup %2891 }
 0x35b   :  { %v1007_v4 = vsel %vm1006_vm7, %v4498_v50, %v1005_v48  ;;  %vm1219_vm6 = vcmp.eq.f32.partialorder %v4507_v11, 0.0  ;;  %vm1210_vm5 = vcmp.eq.f32.partialorder %v4509_v62, inf  ;;  %vm2292_vm2 = vcmask 15360  }
 0x35c   :  { %v1028_v13 = vsel %vm1027_vm9, %v4503_v44, %v1026_v6  ;;  %v1216_v55 = vmul.f32 %v2890_v3, %v4507_v11  ;;  %v1211_v54 = vsel %vm1210_vm5, %v4509_v62, %v1209_v29  ;;  %v2437_v38 = vadd.s32 4286578688, %v2186_v51 }
 0x35d   :  { %vm2301_vm0 = vcmask 23552   ;;  %v4654_v14 = vsel %vm1015_vm10, %v1016_v30, %v1014_v43  ;;  %v1220_v26 = vand.u32 2147483648, %v4507_v11  ;;  %vm1212_vm12 = vcmp.eq.f32.partialorder %v4509_v62, 0.0 }
 0x35e   :  { %v1213_v47 = vand.u32 2147483648, %v4509_v62  ;;  %v4663_v8 = vsel %vm1008_vm8, %v1009_v56, %v1007_v4  ;;  %v1019_v39 = vmul.f32 %v2892_v20, %v4505_v2  ;;  %vm1231_vm3 = vcmp.eq.f32.partialorder %v4511_v32, inf }
 0x35f   :  { %v2894_v63 = vpop.eup %2893  ;;  %v4670_v53 = vsel %vm1029_vm1, %v1030_v17, %v1028_v13  ;;  %v1234_v62 = vand.u32 2147483648, %v4511_v32  ;;  %vm1020_vm13 = vcmp.eq.f32.partialorder %v4505_v2, inf  ;;  %v1218_v50 = vsel %vm1217_vm11, %v4507_v11, %v1216_v55 }
 0x360   :  { %v1214_v19 = vsel %vm1212_vm12, %v1213_v47, %v1211_v54  ;;  %v4678_v18 = vand.u32 4294967232, %v2437_v38  ;;  %v2436_v7 = vadd.s32 4286578688, %v4575_v37  ;;  %v1223_v40 = vmul.f32 %v2894_v63, %v4513_v33 }
 0x361   :  { %vm1224_vm15 = vcmp.eq.f32.partialorder %v4513_v33, inf  ;;  %v1264_v16 = vadd.f32 %v1214_v19, %v982_v45  ;;  %vm1233_vm10 = vcmp.eq.f32.partialorder %v4511_v32, 0.0  ;;  %v1221_v52 = vsel %vm1219_vm6, %v1220_v26, %v1218_v50 }
 0x362   :  { %v1227_v56 = vand.u32 2147483648, %v4513_v33  ;;  %v4697_v27 = vand.u32 4294967232, %v2436_v7  ;;  %v1265_v3 = vadd.f32 %v1221_v52, %v4617_v34  ;;  %vm1226_vm1 = vcmp.eq.f32.partialorder %v4513_v33, 0.0 }
 0x363   :  { %vm1245_vm11 = vcmp.eq.f32.partialorder %v4515_v31, inf  ;;  %vm1247_vm6 = vcmp.eq.f32.partialorder %v4515_v31, 0.0  ;;  %v1248_v19 = vand.u32 2147483648, %v4515_v31 }
 0x369   :  { %v4593_v15 = vpop.xlane.xlu0 %1417 }
 0x36a   :  { %2895 = vrsqrt.f32 %v4593_v15  ;;  %v4622_v36 = vpop.xlane.xlu1 %1420  ;;  %vm1442_vm14 = vcmp.eq.f32.partialorder %v4593_v15, inf  ;;  %v1445_v30 = vand.u32 2147483648, %v4593_v15  ;;  %vm1444_vm7 = vcmp.eq.f32.partialorder %v4593_v15, 0.0 }
 0x36b   :  { %2897 = vrsqrt.f32 %v4511_v32  ;;  %vm1449_vm8 = vcmp.eq.f32.partialorder %v4622_v36, inf  ;;  %v1452_v11 = vand.u32 2147483648, %v4622_v36  ;;  %vm1451_vm9 = vcmp.eq.f32.partialorder %v4622_v36, 0.0 }
 0x36c   :  { %2899 = vrsqrt.f32 %v4622_v36 }
 0x36d   :  { %2901 = vrsqrt.f32 %v4515_v31  ;;  %v4659_v5 = vpop.xlane.xlu0 %1423 }
 0x36e   :  { %2903 = vrsqrt.f32 %v4659_v5  ;;  %vm1456_vm5 = vcmp.eq.f32.partialorder %v4659_v5, inf  ;;  %v1459_v26 = vand.u32 2147483648, %v4659_v5  ;;  %vm1458_vm12 = vcmp.eq.f32.partialorder %v4659_v5, 0.0 }
 0x36f   :  { %2905 = vrsqrt.f32 %v4517_v25 }
 0x372   :  { %v4686_v51 = vpop.xlane.xlu1 %1426 }
 0x373   :  { %2907 = vrsqrt.f32 %v4686_v51 }
 0x374   :  { %v2896_v60 = vpop.eup %2895  ;;  %2909 = vrsqrt.f32 %v4678_v18 }
 0x375   :  { %v2898_v42 = vpop.eup %2897  ;;  %v1441_v44 = vmul.f32 %v2896_v60, %v4593_v15  ;;  %2911 = vrsqrt.f32 %v4519_v46 }
 0x376   :  { %v2900_v37 = vpop.eup %2899  ;;  %v1230_v61 = vmul.f32 %v2898_v42, %v4511_v32 }
 0x377   :  { %v1443_v22 = vsel %vm1442_vm14, %v4593_v15, %v1441_v44  ;;  %v1448_v48 = vmul.f32 %v2900_v37, %v4622_v36  ;;  %v2902_v29 = vpop.eup %2901  ;;  %v1225_v15 = vsel %vm1224_vm15, %v4513_v33, %v1223_v40  ;;  %v4727_v33 = vsel %vm1020_vm13, %v4505_v2, %v1019_v39 }
 0x378   :  { %v1446_v28 = vsel %vm1444_vm7, %v1445_v30, %v1443_v22  ;;  %v1232_v20 = vsel %vm1231_vm3, %v4511_v32, %v1230_v61  ;;  %v2904_v34 = vpop.eup %2903  ;;  %vm1238_vm3 = vcmp.eq.f32.partialorder %v4517_v25, inf  ;;  %vm1240_vm13 = vcmp.eq.f32.partialorder %v4517_v25, 0.0 }
 0x379   :  { %v1496_v6 = vadd.f32 %v1446_v28, %v1264_v16  ;;  %v1450_v45 = vsel %vm1449_vm8, %v4622_v36, %v1448_v48  ;;  %v4711_v43 = vpop.xlane.xlu1 %1432  ;;  %v1228_v36 = vsel %vm1226_vm1, %v1227_v56, %v1225_v15  ;;  %v2906_v55 = vpop.eup %2905  ;;  %v1455_v54 = vmul.f32 %v2904_v34, %v4659_v5 }
 0x37a   :  { %v1453_v4 = vsel %vm1451_vm9, %v1452_v11, %v1450_v45  ;;  %2913 = vrsqrt.f32 %v4711_v43  ;;  %v1235_v47 = vsel %vm1233_vm10, %v1234_v62, %v1232_v20  ;;  %v1266_v63 = vadd.f32 %v1228_v36, %v4635_v21 }
 0x37b   :  { %v2293_v17 = vsel %vm2292_vm2, %v4531_v23, %v1496_v6  ;;  %v1244_v23 = vmul.f32 %v2902_v29, %v4515_v31  ;;  %2915 = vrsqrt.f32 %v4697_v27  ;;  %v1497_v13 = vadd.f32 %v1453_v4, %v1265_v3 }
 0x37c   :  { %2302 = vst.msk [vmem:[%s4879_s8] sm:$0xff] %vm2301_vm0, %v2293_v17  ;;  %2917 = vrsqrt.f32 %v4521_v0  ;;  %v1457_v39 = vsel %vm1456_vm5, %v4659_v5, %v1455_v54  ;;  %v4749_v62 = vpop.xlane.xlu0 %1429  ;;  %v1237_v21 = vmul.f32 %v2906_v55, %v4517_v25  ;;  %v1267_v5 = vadd.f32 %v1235_v47, %v4631_v49 }
 0x37d   :  { %v2294_v38 = vsel %vm2292_vm2, %v4527_v57, %v1497_v13  ;;  %v2908_v60 = vpop.eup %2907  ;;  %v1246_v57 = vsel %vm1245_vm11, %v4515_v31, %v1244_v23  ;;  %v1460_v32 = vsel %vm1458_vm12, %v1459_v26, %v1457_v39  ;;  %2919 = vrsqrt.f32 %v4749_v62 }
 0x37e   :  { %2303 = vst.msk [vmem:[%s4879_s8 + $0x8] sm:$0xff] %vm2301_vm0, %v2294_v38  ;;  %v1462_v42 = vmul.f32 %v2908_v60, %v4686_v51  ;;  %v1498_v50 = vadd.f32 %v1460_v32, %v1266_v63  ;;  %v2910_v7 = vpop.eup %2909  ;;  %vm1463_vm15 = vcmp.eq.f32.partialorder %v4686_v51, inf  ;;  %v1466_v44 = vand.u32 2147483648, %v4686_v51  ;;  %v4764_v37 = vpop.xlane.xlu1 %1438 }
 0x37f   :  { %v2912_v40 = vpop.eup %2911  ;;  %v1249_v30 = vsel %vm1247_vm6, %v1248_v19, %v1246_v57  ;;  %vm1465_vm14 = vcmp.eq.f32.partialorder %v4686_v51, 0.0  ;;  %v1241_v49 = vand.u32 2147483648, %v4517_v25  ;;  %vm1259_vm10 = vcmp.eq.f32.partialorder %v4519_v46, inf }
 0x380   :  { %v1464_v16 = vsel %vm1463_vm15, %v4686_v51, %v1462_v42  ;;  %v2295_v22 = vsel %vm2292_vm2, %v4543_v12, %v1498_v50  ;;  %2921 = vrsqrt.f32 %v4764_v37  ;;  %v1239_v51 = vsel %vm1238_vm3, %v4517_v25, %v1237_v21 }
 0x381   :  { %v1467_v52 = vsel %vm1465_vm14, %v1466_v44, %v1464_v16  ;;  %2304 = vst.msk [vmem:[%s4879_s8 + $0x10] sm:$0xff] %vm2301_vm0, %v2295_v22  ;;  %vm1261_vm7 = vcmp.eq.f32.partialorder %v4519_v46, 0.0  ;;  %v2269_v12 = vmul.f32 %v2910_v7, %v4678_v18  ;;  %v1269_v28 = vadd.f32 %v1249_v30, %v4654_v14 }
 0x382   :  { %v1499_v61 = vadd.f32 %v1467_v52, %v1267_v5  ;;  %v1258_v48 = vmul.f32 %v2912_v40, %v4519_v46  ;;  %v1262_v6 = vand.u32 2147483648, %v4519_v46  ;;  %v4782_v15 = vpop.xlane.xlu0 %1435  ;;  %vm1477_vm8 = vcmp.eq.f32.partialorder %v4711_v43, inf }
 0x383   :  { %v1480_v45 = vand.u32 2147483648, %v4711_v43  ;;  %2923 = vrsqrt.f32 %v4782_v15  ;;  %v1242_v14 = vsel %vm1240_vm13, %v1241_v49, %v1239_v51  ;;  %vm2270_vm9 = vcmp.eq.f32.partialorder %v4678_v18, inf }
 0x384   :  { %v2914_v31 = vpop.eup %2913  ;;  %v2296_v3 = vsel %vm2292_vm2, %v4538_v41, %v1499_v61  ;;  %vm1479_vm1 = vcmp.eq.f32.partialorder %v4711_v43, 0.0  ;;  %vm1022_vm11 = vcmp.eq.f32.partialorder %v4505_v2, 0.0  ;;  %vm1252_vm6 = vcmp.eq.f32.partialorder %v4521_v0, inf }
 0x385   :  { %v2916_v56 = vpop.eup %2915  ;;  %v1476_v29 = vmul.f32 %v2914_v31, %v4711_v43  ;;  %2305 = vst.msk [vmem:[%s4879_s8 + $0x18] sm:$0xff] %vm2301_vm0, %v2296_v3  ;;  %v2271_v41 = vsel %vm2270_vm9, %v4678_v18, %v2269_v12  ;;  %v1260_v4 = vsel %vm1259_vm10, %v4519_v46, %v1258_v48  ;;  %v2273_v36 = vand.u32 2147483648, %v4678_v18 }
 0x386   :  { %v2918_v11 = vpop.eup %2917  ;;  %v2262_v25 = vmul.f32 %v2916_v56, %v4697_v27  ;;  %vm1254_vm5 = vcmp.eq.f32.partialorder %v4521_v0, 0.0  ;;  %v1255_v55 = vand.u32 2147483648, %v4521_v0  ;;  %vm2272_vm12 = vcmp.eq.f32.partialorder %v4678_v18, 0.0 }
 0x387   :  { %v1478_v17 = vsel %vm1477_vm8, %v4711_v43, %v1476_v29  ;;  %v1251_v34 = vmul.f32 %v2918_v11, %v4521_v0  ;;  %v2920_v13 = vpop.eup %2919  ;;  %v1268_v43 = vadd.f32 %v1242_v14, %v4663_v8  ;;  %v2274_v54 = vsel %vm2272_vm12, %v2273_v36, %v2271_v41 }
 0x388   :  { %v1481_v20 = vsel %vm1479_vm1, %v1480_v45, %v1478_v17  ;;  %vm2263_vm3 = vcmp.eq.f32.partialorder %v4697_v27, inf  ;;  %v1469_v26 = vmul.f32 %v2920_v13, %v4749_v62  ;;  %v1263_v47 = vsel %vm1261_vm7, %v1262_v6, %v1260_v4 }
 0x389   :  { %v1501_v23 = vadd.f32 %v1481_v20, %v1269_v28  ;;  %v2264_v63 = vsel %vm2263_vm3, %v4697_v27, %v2262_v25  ;;  %vm1470_vm13 = vcmp.eq.f32.partialorder %v4749_v62, inf  ;;  %v1473_v8 = vand.u32 2147483648, %v4749_v62 }
 0x38a   :  { %v2922_v18 = vpop.eup %2921  ;;  %v2266_v39 = vand.u32 2147483648, %v4697_v27  ;;  %v1471_v46 = vsel %vm1470_vm13, %v4749_v62, %v1469_v26  ;;  %vm1472_vm15 = vcmp.eq.f32.partialorder %v4749_v62, 0.0  ;;  %v2282_v60 = vadd.f32 %v2274_v54, %v4565_v35 }
 0x38b   :  { %v2298_v38 = vsel %vm2292_vm2, %v4547_v1, %v1501_v23  ;;  %v1253_v1 = vsel %vm1252_vm6, %v4521_v0, %v1251_v34  ;;  %vm2265_vm14 = vcmp.eq.f32.partialorder %v4697_v27, 0.0  ;;  %v1474_v57 = vsel %vm1472_vm15, %v1473_v8, %v1471_v46 }
 0x38c   :  { %2307 = vst.msk [vmem:[%s4879_s8 + $0x28] sm:$0xff] %vm2301_vm0, %v2298_v38  ;;  %v1490_v19 = vmul.f32 %v2922_v18, %v4764_v37  ;;  %v2267_v32 = vsel %vm2265_vm14, %v2266_v39, %v2264_v63  ;;  %v1500_v21 = vadd.f32 %v1474_v57, %v1268_v43  ;;  %vm1491_vm10 = vcmp.eq.f32.partialorder %v4764_v37, inf }
 0x38d   :  { %v1494_v42 = vand.u32 2147483648, %v4764_v37  ;;  %v2924_v50 = vpop.eup %2923  ;;  %v1256_v7 = vsel %vm1254_vm5, %v1255_v55, %v1253_v1  ;;  %v1271_v5 = vadd.f32 %v1263_v47, %v4670_v53  ;;  %vm1493_vm7 = vcmp.eq.f32.partialorder %v4764_v37, 0.0 }
 0x38e   :  { %v1492_v62 = vsel %vm1491_vm10, %v4764_v37, %v1490_v19  ;;  %v1024_v35 = vsel %vm1022_vm11, %v1023_v58, %v4727_v33  ;;  %v2297_v27 = vsel %vm2292_vm2, %v4551_v59, %v1500_v21  ;;  %v1483_v40 = vmul.f32 %v2924_v50, %v4782_v15 }
 0x38f   :  { %v1495_v44 = vsel %vm1493_vm7, %v1494_v42, %v1492_v62  ;;  %v2281_v0 = vadd.f32 %v2267_v32, %v4567_v9  ;;  %2306 = vst.msk [vmem:[%s4879_s8 + $0x20] sm:$0xff] %vm2301_vm0, %v2297_v27  ;;  %vm1484_vm8 = vcmp.eq.f32.partialorder %v4782_v15, inf  ;;  %v1487_v30 = vand.u32 2147483648, %v4782_v15 }
 0x390   :  { %v1503_v53 = vadd.f32 %v1495_v44, %v1271_v5  ;;  %v2291_v2 = vsel %vm2283_vm4, %v4496_v10, %v2282_v60  ;;  %v1270_v58 = vadd.f32 %v1256_v7, %v1024_v35  ;;  %v1485_v59 = vsel %vm1484_vm8, %v4782_v15, %v1483_v40 }
 0x391   :  { %vm1486_vm9 = vcmp.eq.f32.partialorder %v4782_v15, 0.0  ;;  %v2290_v22 = vsel %vm2283_vm4, %v4501_v24, %v2281_v0 }
 0x392   :  { %v2300_v9 = vsel %vm2292_vm2, %v2291_v2, %v1503_v53  ;;  %v1488_v33 = vsel %vm1486_vm9, %v1487_v30, %v1485_v59 }
 0x393   :  { %2309 = vst.msk [vmem:[%s4879_s8 + $0x38] sm:$0xff] %vm2301_vm0, %v2300_v9  ;;  %v1502_v16 = vadd.f32 %v1488_v33, %v1270_v58 }
 0x395   :  { %v2299_v37 = vsel %vm2292_vm2, %v2290_v22, %v1502_v16 }
 0x396   :  { %2308 = vst.msk [vmem:[%s4879_s8 + $0x30] sm:$0xff] %vm2301_vm0, %v2299_v37 }

</bundles_post_ra>
